<compile_context>
chip_gen: v7x
topology: tpu7x:2x2x1
jax: 0.10.0
libtpu: 0.0.40
codegen_flags: <defaults>
</compile_context>

<pallas_src>
import functools
import numpy as np

import jax
import jax.numpy as jnp
from jax.experimental import pallas as pl
from jax.experimental.pallas import tpu as pltpu


_VMEM_LIMIT = 32 * 1024 * 1024  # explicit scoped-VMEM budget (safe on v5e/v6e/v7x)


# ----------------------------- tile pickers --------------------------------

def _pick_sublane(dim, target=256):
    """Largest divisor of `dim` that is a multiple of 8 and <= target; else full dim."""
    if dim <= target:
        return dim
    t = (target // 8) * 8
    while t >= 8:
        if dim % t == 0:
            return t
        t -= 8
    return dim


def _pick_lane(dim, target=512):
    """Largest divisor of `dim` <= target that is a multiple of 256 (v6e MXU width),
    falling back to 128; else full dim."""
    if dim <= target:
        return dim
    for align in (256, 128):
        t = (target // align) * align
        while t >= align:
            if dim % t == 0:
                return t
            t -= align
    return dim


# ----------------------------- Pallas kernels ------------------------------

def _gelu(x):
    # exact (erf-based) GELU, matching torch.nn.GELU() default
    return 0.5 * x * (1.0 + jax.lax.erf(x * jnp.float32(0.7071067811865476)))


def _linear_kernel(x_ref, w_ref, b_ref, *rest, activation, add_residual):
    """Tiled matmul: y = act(x @ w + b) [+ residual]; f32 accumulator scratch."""
    if add_residual:
        r_ref, o_ref, acc_ref = rest
    else:
        o_ref, acc_ref = rest

    k = pl.program_id(2)

    @pl.when(k == 0)
    def _():
        acc_ref[...] = jnp.zeros_like(acc_ref)

    acc_ref[...] += jnp.dot(x_ref[...], w_ref[...],
                            preferred_element_type=jnp.float32)

    @pl.when(k == pl.num_programs(2) - 1)
    def _():
        y = acc_ref[...] + b_ref[...]
        if activation == "gelu":
            y = _gelu(y)
        if add_residual:
            y = y + rest[0][...].astype(jnp.float32)
        o_ref[...] = y.astype(o_ref.dtype)


def _conv_tap_kernel(x_ref, w_ref, b_ref, *rest, activation, add_pos):
    """Conv1d(k=3) as 3 accumulated per-tap matmuls; tap index is the reduction axis."""
    if add_pos:
        pos_ref, o_ref, acc_ref = rest
    else:
        o_ref, acc_ref = rest

    t = pl.program_id(3)

    @pl.when(t == 0)
    def _():
        acc_ref[...] = jnp.zeros_like(acc_ref)

    acc_ref[...] += jnp.dot(x_ref[0, 0], w_ref[0],
                            preferred_element_type=jnp.float32)

    @pl.when(t == pl.num_programs(3) - 1)
    def _():
        y = acc_ref[...] + b_ref[...]
        if activation == "gelu":
            y = _gelu(y)
        if add_pos:
            y = y + rest[0][...]            # fused sinusoidal positional embedding
        o_ref[0] = y.astype(o_ref.dtype)


def _layernorm_kernel(x_ref, g_ref, b_ref, o_ref, *, eps):
    x = x_ref[...].astype(jnp.float32)
    mean = jnp.mean(x, axis=-1, keepdims=True)
    xc = x - mean
    var = jnp.mean(xc * xc, axis=-1, keepdims=True)
    y = xc * jax.lax.rsqrt(var + eps) * g_ref[...] + b_ref[...]
    o_ref[...] = y.astype(o_ref.dtype)


def _flash_attn_kernel(q_ref, k_ref, v_ref, o_ref, m_sc, l_sc, acc_sc, *, scale):
    """Flash-style attention: online softmax over the kv grid axis."""
    ki = pl.program_id(2)

    @pl.when(ki == 0)
    def _():
        m_sc[...] = jnp.full_like(m_sc, -jnp.inf)
        l_sc[...] = jnp.zeros_like(l_sc)
        acc_sc[...] = jnp.zeros_like(acc_sc)

    # contract the dh axes directly (no k.T relayout through the XLU)
    s = jax.lax.dot_general(q_ref[0], k_ref[0],
                            (((1,), (1,)), ((), ())),
                            preferred_element_type=jnp.float32) * scale

    m_prev = m_sc[...]
    m_new = jnp.maximum(m_prev, jnp.max(s, axis=-1, keepdims=True))
    alpha = jnp.exp(m_prev - m_new)
    p = jnp.exp(s - m_new)
    l_sc[...] = alpha * l_sc[...] + jnp.sum(p, axis=-1, keepdims=True)
    acc_sc[...] = alpha * acc_sc[...] + jnp.dot(p.astype(v_ref.dtype), v_ref[0],
                                                preferred_element_type=jnp.float32)
    m_sc[...] = m_new

    @pl.when(ki == pl.num_programs(2) - 1)
    def _():
        inv_l = pl.reciprocal(l_sc[...], approx=True)
        o_ref[0] = (acc_sc[...] * inv_l).astype(o_ref.dtype)


# ------------------------------- wrappers ----------------------------------

def linear(x2d, w, b, activation=None, residual=None, out_dtype=jnp.bfloat16):
    """y = act(x2d @ w + b) [+ residual]; bf16 MXU inputs, f32 accumulate."""
    M, K = x2d.shape
    K2, N = w.shape
    assert K == K2
    tm = _pick_sublane(M, 256)
    tn = _pick_lane(N, 512)
    tk = _pick_lane(K, 512)
    grid = (M // tm, N // tn, K // tk)

    in_specs = [
        pl.BlockSpec((tm, tk), lambda i, j, k: (i, k)),
        pl.BlockSpec((tk, tn), lambda i, j, k: (k, j)),
        pl.BlockSpec((1, tn), lambda i, j, k: (0, j)),
    ]
    args = [x2d.astype(jnp.bfloat16), w.astype(jnp.bfloat16),
            b.astype(jnp.float32).reshape(1, N)]
    add_residual = residual is not None
    if add_residual:
        in_specs.append(pl.BlockSpec((tm, tn), lambda i, j, k: (i, j)))
        args.append(residual.astype(jnp.bfloat16))

    return pl.pallas_call(
        functools.partial(_linear_kernel, activation=activation,
                          add_residual=add_residual),
        out_shape=jax.ShapeDtypeStruct((M, N), out_dtype),
        grid=grid,
        in_specs=in_specs,
        out_specs=pl.BlockSpec((tm, tn), lambda i, j, k: (i, j)),
        scratch_shapes=[pltpu.VMEM((tm, tn), jnp.float32)],
        compiler_params=pltpu.CompilerParams(
            dimension_semantics=("parallel", "parallel", "arbitrary"),
            vmem_limit_bytes=_VMEM_LIMIT),
    )(*args)


def conv1d(x_btc, w_torch, b, stride, activation, pos=None,
           out_dtype=jnp.bfloat16):
    """PyTorch-semantics Conv1d (kernel=3, pad=1) as 3 accumulated matmuls.

    x_btc: [B, T, Cin] channels-last; w_torch: [Cout, Cin, K] (torch layout).
    `pos` (optional, [>=T_out, Cout]) is added in the epilogue after GELU."""
    B, T, Cin = x_btc.shape
    Cout, _, K = w_torch.shape
    pad = 1
    T_out = (T + 2 * pad - K) // stride + 1

    xp = jnp.pad(x_btc, ((0, 0), (pad, pad), (0, 0))).astype(jnp.bfloat16)
    # One shifted (and strided) view per tap -> [K, B, T_out, Cin]; keeps the
    # matmul inner dim = Cin (lane-aligned) instead of im2col's K*Cin.
    x_taps = jnp.stack(
        [jax.lax.slice(xp, (0, t, 0),
                       (B, t + stride * (T_out - 1) + 1, Cin),
                       (1, stride, 1))
         for t in range(K)], axis=0)
    w_taps = jnp.transpose(w_torch, (2, 1, 0)).astype(jnp.bfloat16)  # [K, Cin, Cout]
    b2 = b.astype(jnp.float32).reshape(1, Cout)

    tt = _pick_sublane(T_out, 256)
    tn = _pick_lane(Cout, 512)
    grid = (B, T_out // tt, Cout // tn, K)

    in_specs = [
        pl.BlockSpec((1, 1, tt, Cin), lambda bi, i, j, t: (t, bi, i, 0)),
        pl.BlockSpec((1, Cin, tn), lambda bi, i, j, t: (t, 0, j)),
        pl.BlockSpec((1, tn), lambda bi, i, j, t: (0, j)),
    ]
    args = [x_taps, w_taps, b2]
    add_pos = pos is not None
    if add_pos:
        in_specs.append(pl.BlockSpec((tt, tn), lambda bi, i, j, t: (i, j)))
        args.append(pos[:T_out].astype(jnp.float32))

    return pl.pallas_call(
        functools.partial(_conv_tap_kernel, activation=activation,
                          add_pos=add_pos),
        out_shape=jax.ShapeDtypeStruct((B, T_out, Cout), out_dtype),
        grid=grid,
        in_specs=in_specs,
        out_specs=pl.BlockSpec((1, tt, tn), lambda bi, i, j, t: (bi, i, j)),
        scratch_shapes=[pltpu.VMEM((tt, tn), jnp.float32)],
        compiler_params=pltpu.CompilerParams(
            dimension_semantics=("parallel", "parallel", "parallel", "arbitrary"),
            vmem_limit_bytes=_VMEM_LIMIT),
    )(*args)


def layer_norm(x2d, g, b, eps=1e-5, out_dtype=jnp.bfloat16):
    M, D = x2d.shape
    tm = _pick_sublane(M, 512)
    return pl.pallas_call(
        functools.partial(_layernorm_kernel, eps=eps),
        out_shape=jax.ShapeDtypeStruct((M, D), out_dtype),
        grid=(M // tm,),
        in_specs=[
            pl.BlockSpec((tm, D), lambda i: (i, 0)),
            pl.BlockSpec((1, D), lambda i: (0, 0)),
            pl.BlockSpec((1, D), lambda i: (0, 0)),
        ],
        out_specs=pl.BlockSpec((tm, D), lambda i: (i, 0)),
        compiler_params=pltpu.CompilerParams(
            dimension_semantics=("parallel",),
            vmem_limit_bytes=_VMEM_LIMIT),
    )(x2d, g.astype(jnp.float32).reshape(1, D),
      b.astype(jnp.float32).reshape(1, D))


def flash_attention(q, k, v, scale):
    """q,k,v: [B*H, T, dh] bf16 -> [B*H, T, dh] bf16 (online-softmax flash)."""
    BH, T, dh = q.shape
    tq = _pick_sublane(T, 128)
    tk = _pick_sublane(T, 128)
    grid = (BH, T // tq, T // tk)
    qo_spec = pl.BlockSpec((1, tq, dh), lambda b, qi, ki: (b, qi, 0))
    kv_spec = pl.BlockSpec((1, tk, dh), lambda b, qi, ki: (b, ki, 0))
    # TODO(synk): for real Whisper (dh=64) pack 2 heads per block for lane-dense
    # (128-wide) output stores; at these shapes dh is the full minor dim.
    return pl.pallas_call(
        functools.partial(_flash_attn_kernel, scale=scale),
        out_shape=jax.ShapeDtypeStruct((BH, T, dh), jnp.bfloat16),
        grid=grid,
        in_specs=[qo_spec, kv_spec, kv_spec],
        out_specs=qo_spec,
        scratch_shapes=[pltpu.VMEM((tq, 1), jnp.float32),
                        pltpu.VMEM((tq, 1), jnp.float32),
                        pltpu.VMEM((tq, dh), jnp.float32)],
        compiler_params=pltpu.CompilerParams(
            dimension_semantics=("parallel", "parallel", "arbitrary"),
            vmem_limit_bytes=_VMEM_LIMIT),
    )(q, k, v)


# ------------------------------- JAX glue ----------------------------------

def sinusoids(length, channels, max_timescale=10000.0):
    """Whisper fixed sinusoidal positional embeddings."""
    assert channels % 2 == 0
    log_timescale_increment = np.log(max_timescale) / (channels // 2 - 1)
    inv_timescales = np.exp(-log_timescale_increment * np.arange(channels // 2))
    scaled_time = np.arange(length)[:, None] * inv_timescales[None, :]
    return np.concatenate([np.sin(scaled_time), np.cos(scaled_time)],
                          axis=1).astype(np.float32)


def multi_head_attention(x2d, lp, B, T, d_model, n_heads):
    dh = d_model // n_heads
    scale = dh ** -0.5
    qkv = linear(x2d, lp["qkv_w"], lp["qkv_b"])            # fused Q/K/V projection
    qkv = qkv.reshape(B, T, 3, n_heads, dh)
    qkv = jnp.transpose(qkv, (2, 0, 3, 1, 4)).reshape(3, B * n_heads, T, dh)
    o = flash_attention(qkv[0], qkv[1], qkv[2], scale)
    o = o.reshape(B, n_heads, T, dh).transpose(0, 2, 1, 3).reshape(B * T, d_model)
    return o


def init_params(key, n_mels, d_model, d_ff, n_layers, max_pos):
    def dense(k, shape, scale=0.05):
        return (scale * jax.random.normal(k, shape)).astype(jnp.float32)

    keys = jax.random.split(key, 2 + n_layers)
    zeros = lambda n: jnp.zeros((n,), jnp.float32)
    ones = lambda n: jnp.ones((n,), jnp.float32)

    params = {
        "conv1_w": dense(keys[0], (d_model, n_mels, 3)),   # torch Conv1d layout [Cout, Cin, K]
        "conv1_b": zeros(d_model),
        "conv2_w": dense(keys[1], (d_model, d_model, 3)),
        "conv2_b": zeros(d_model),
        "pos_emb": jnp.asarray(sinusoids(max_pos, d_model)),
        "ln_f_g": ones(d_model), "ln_f_b": zeros(d_model),
        "layers": [],
    }
    for li in range(n_layers):
        lk = jax.random.split(keys[2 + li], 6)
        q_w = dense(lk[0], (d_model, d_model))
        k_w = dense(lk[1], (d_model, d_model))
        v_w = dense(lk[2], (d_model, d_model))
        params["layers"].append({
            "ln1_g": ones(d_model), "ln1_b": zeros(d_model),
            # fused QKV weight/bias (Whisper k_proj has no bias -> zeros)
            "qkv_w": jnp.concatenate([q_w, k_w, v_w], axis=1),
            "qkv_b": jnp.concatenate([zeros(d_model), zeros(d_model),
                                      zeros(d_model)], axis=0),
            "o_w": dense(lk[3], (d_model, d_model)), "o_b": zeros(d_model),
            "ln2_g": ones(d_model), "ln2_b": zeros(d_model),
            "fc1_w": dense(lk[4], (d_model, d_ff)), "fc1_b": zeros(d_ff),
            "fc2_w": dense(lk[5], (d_ff, d_model)), "fc2_b": zeros(d_model),
        })
    return params


def whisper_full_feats_forward(params, mel_bct, n_heads):
    """mel_bct: [B, n_mels, T] (PyTorch NCW) -> hidden states [B, T//2, d_model]."""
    x = jnp.transpose(mel_bct, (0, 2, 1))                   # -> [B, T, n_mels]
    x = conv1d(x, params["conv1_w"], params["conv1_b"], stride=1,
               activation="gelu")
    # conv2 epilogue fuses GELU + sinusoidal positional embedding.
    x = conv1d(x, params["conv2_w"], params["conv2_b"], stride=2,
               activation="gelu", pos=params["pos_emb"])
    B, T2, d_model = x.shape

    h = x.reshape(B * T2, d_model)                          # bf16 activations
    for lp in params["layers"]:                             # pre-LN encoder layers
        hn = layer_norm(h, lp["ln1_g"], lp["ln1_b"])
        attn = multi_head_attention(hn, lp, B, T2, d_model, n_heads)
        h = linear(attn, lp["o_w"], lp["o_b"], residual=h)  # residual fused
        hn = layer_norm(h, lp["ln2_g"], lp["ln2_b"])
        ff = linear(hn, lp["fc1_w"], lp["fc1_b"], activation="gelu")
        h = linear(ff, lp["fc2_w"], lp["fc2_b"], residual=h)  # residual fused
    h = layer_norm(h, params["ln_f_g"], params["ln_f_b"], out_dtype=jnp.float32)
    return h.reshape(B, T2, d_model)


if __name__ == "__main__":
    # Small Whisper-style config.
    B, n_mels, T = 2, 16, 16
    d_model, n_heads, d_ff, n_layers = 32, 4, 64, 2

    key = jax.random.PRNGKey(0)
    k_in, k_par = jax.random.split(key)
    mel = jax.random.normal(k_in, (B, n_mels, T), dtype=jnp.float32)  # log-mel features, NCW
    params = init_params(k_par, n_mels, d_model, d_ff, n_layers, max_pos=T)

    fwd = jax.jit(functools.partial(whisper_full_feats_forward, n_heads=n_heads))
    out = fwd(params, mel)
    out = jax.block_until_ready(out)
    assert out.shape == (B, T // 2, d_model), out.shape
    assert jnp.all(jnp.isfinite(out))
    print("KERNEL_OK")
</pallas_src>

<mosaic_0001>
module attributes {stable_mosaic.version = 11 : i64} {
  func.func @_conv_tap_kernel(%arg0: i32, %arg1: i32, %arg2: i32, %arg3: i32, %arg4: memref<1x1x16x16xbf16, #tpu.memory_space<vmem>>, %arg5: memref<1x16x32xbf16, #tpu.memory_space<vmem>>, %arg6: memref<1x32xf32, #tpu.memory_space<vmem>>, %arg7: memref<1x16x32xbf16, #tpu.memory_space<vmem>>, %arg8: memref<16x32xf32, #tpu.memory_space<vmem>>) attributes {dimension_semantics = [#tpu.dimension_semantics<parallel>, #tpu.dimension_semantics<parallel>, #tpu.dimension_semantics<parallel>, #tpu.dimension_semantics<arbitrary>], iteration_bounds = array<i64: 2, 1, 1, 3>, scalar_prefetch = 0 : i64, scratch_operands = 1 : i64, tpu.core_type = #tpu.core_type<tc>, window_params = [{transform_indices = @transform_0, window_bounds = array<i64: 1, 1, 16, 16>}, {transform_indices = @transform_1, window_bounds = array<i64: 1, 16, 32>}, {transform_indices = @transform_2, window_bounds = array<i64: 1, 32>}, {transform_indices = @transform_3, window_bounds = array<i64: 1, 16, 32>}]} {
    %c0_i32 = arith.constant 0 : i32
    %0 = arith.cmpi eq, %arg3, %c0_i32 : i32
    %1 = arith.extui %0 : i1 to i32
    %c0_i32_0 = arith.constant 0 : i32
    %2 = arith.cmpi ne, %1, %c0_i32_0 : i32
    scf.if %2 {
      %cst_12 = arith.constant 0.000000e+00 : f32
      %14 = vector.broadcast %cst_12 : f32 to vector<16x32xf32>
      %c0_13 = arith.constant 0 : index
      %c0_14 = arith.constant 0 : index
      %15 = vector.load %arg8[%c0_13, %c0_14] : memref<16x32xf32, #tpu.memory_space<vmem>>, vector<16x32xf32>
      tpu.vector_store %arg8[%c0_13, %c0_14], %14 {strides = array<i32>} : memref<16x32xf32, #tpu.memory_space<vmem>>, vector<16x32xf32>,
    } else {
    }
    %c0 = arith.constant 0 : index
    %c0_1 = arith.constant 0 : index
    %3 = vector.load %arg8[%c0, %c0_1] : memref<16x32xf32, #tpu.memory_space<vmem>>, vector<16x32xf32>
    %c0_2 = arith.constant 0 : index
    %c0_3 = arith.constant 0 : index
    %c0_4 = arith.constant 0 : index
    %c0_5 = arith.constant 0 : index
    %4 = vector.load %arg4[%c0_2, %c0_3, %c0_4, %c0_5] : memref<1x1x16x16xbf16, #tpu.memory_space<vmem>>, vector<1x1x16x16xbf16>
    %5 = vector.shape_cast %4 : vector<1x1x16x16xbf16> to vector<16x16xbf16>
    %c0_6 = arith.constant 0 : index
    %c0_7 = arith.constant 0 : index
    %c0_8 = arith.constant 0 : index
    %6 = vector.load %arg5[%c0_6, %c0_7, %c0_8] : memref<1x16x32xbf16, #tpu.memory_space<vmem>>, vector<1x16x32xbf16>
    %7 = vector.shape_cast %6 : vector<1x16x32xbf16> to vector<16x32xbf16>
    %cst = arith.constant dense<0.000000e+00> : vector<16x32xf32>
    %8 = tpu.matmul %5, %7, %cst {dimension_numbers = #tpu.dot_dimension_numbers<[1], [0], [0], [1], [0, 0, 1, 1], [], []>} : vector<16x16xbf16>, vector<16x32xbf16>, vector<16x32xf32> -> vector<16x32xf32>
    %9 = arith.addf %3, %8 : vector<16x32xf32>
    %c0_9 = arith.constant 0 : index
    %c0_10 = arith.constant 0 : index
    %10 = vector.load %arg8[%c0_9, %c0_10] : memref<16x32xf32, #tpu.memory_space<vmem>>, vector<16x32xf32>
    tpu.vector_store %arg8[%c0_9, %c0_10], %9 {strides = array<i32>} : memref<16x32xf32, #tpu.memory_space<vmem>>, vector<16x32xf32>,
    %c2_i32 = arith.constant 2 : i32
    %11 = arith.cmpi eq, %arg3, %c2_i32 : i32
    %12 = arith.extui %11 : i1 to i32
    %c0_i32_11 = arith.constant 0 : i32
    %13 = arith.cmpi ne, %12, %c0_i32_11 : i32
    scf.if %13 {
      %c0_12 = arith.constant 0 : index
      %c0_13 = arith.constant 0 : index
      %14 = vector.load %arg8[%c0_12, %c0_13] : memref<16x32xf32, #tpu.memory_space<vmem>>, vector<16x32xf32>
      %c0_14 = arith.constant 0 : index
      %c0_15 = arith.constant 0 : index
      %15 = vector.load %arg6[%c0_14, %c0_15] : memref<1x32xf32, #tpu.memory_space<vmem>>, vector<1x32xf32>
      %16 = vector.broadcast %15 : vector<1x32xf32> to vector<16x32xf32>
      %17 = arith.addf %14, %16 : vector<16x32xf32>
      %cst_16 = arith.constant 5.000000e-01 : f32
      %18 = vector.broadcast %cst_16 : f32 to vector<16x32xf32>
      %19 = arith.mulf %18, %17 : vector<16x32xf32>
      %cst_17 = arith.constant 0.707106769 : f32
      %20 = vector.broadcast %cst_17 : f32 to vector<16x32xf32>
      %21 = arith.mulf %17, %20 : vector<16x32xf32>
      %22 = math.erf %21 : vector<16x32xf32>
      %cst_18 = arith.constant 1.000000e+00 : f32
      %23 = vector.broadcast %cst_18 : f32 to vector<16x32xf32>
      %24 = arith.addf %23, %22 : vector<16x32xf32>
      %25 = arith.mulf %19, %24 : vector<16x32xf32>
      %26 = arith.truncf %25 : vector<16x32xf32> to vector<16x32xbf16>
      %c0_19 = arith.constant 0 : index
      %c0_20 = arith.constant 0 : index
      %c0_21 = arith.constant 0 : index
      %27 = vector.load %arg7[%c0_19, %c0_20, %c0_21] : memref<1x16x32xbf16, #tpu.memory_space<vmem>>, vector<1x16x32xbf16>
      %28 = vector.shape_cast %27 : vector<1x16x32xbf16> to vector<16x32xbf16>
      %29 = vector.shape_cast %26 : vector<16x32xbf16> to vector<1x16x32xbf16>
      tpu.vector_store %arg7[%c0_19, %c0_20, %c0_21], %29 {strides = array<i32>} : memref<1x16x32xbf16, #tpu.memory_space<vmem>>, vector<1x16x32xbf16>,
    } else {
    }
    return
  }
  func.func @transform_0(%arg0: i32, %arg1: i32, %arg2: i32, %arg3: i32) -> (i32, i32, i32, i32) {
    %c0_i32 = arith.constant 0 : i32
    %c0_i32_0 = arith.constant 0 : i32
    return %arg3, %arg0, %arg1, %c0_i32 : i32, i32, i32, i32
  }
  func.func @transform_1(%arg0: i32, %arg1: i32, %arg2: i32, %arg3: i32) -> (i32, i32, i32) {
    %c0_i32 = arith.constant 0 : i32
    %c0_i32_0 = arith.constant 0 : i32
    return %arg3, %c0_i32, %arg2 : i32, i32, i32
  }
  func.func @transform_2(%arg0: i32, %arg1: i32, %arg2: i32, %arg3: i32) -> (i32, i32) {
    %c0_i32 = arith.constant 0 : i32
    %c0_i32_0 = arith.constant 0 : i32
    return %c0_i32, %arg2 : i32, i32
  }
  func.func @transform_3(%arg0: i32, %arg1: i32, %arg2: i32, %arg3: i32) -> (i32, i32, i32) {
    %c0_i32 = arith.constant 0 : i32
    return %arg0, %arg1, %arg2 : i32, i32, i32
  }
}

module attributes {stable_mosaic.version = 11 : i64} {
  func.func @_linear_kernel(%arg0: i32, %arg1: i32, %arg2: i32, %arg3: memref<16x32xbf16, #tpu.memory_space<vmem>>, %arg4: memref<32x96xbf16, #tpu.memory_space<vmem>>, %arg5: memref<1x96xf32, #tpu.memory_space<vmem>>, %arg6: memref<16x96xbf16, #tpu.memory_space<vmem>>, %arg7: memref<16x96xf32, #tpu.memory_space<vmem>>) attributes {dimension_semantics = [#tpu.dimension_semantics<parallel>, #tpu.dimension_semantics<parallel>, #tpu.dimension_semantics<arbitrary>], iteration_bounds = array<i64: 1, 1, 1>, scalar_prefetch = 0 : i64, scratch_operands = 1 : i64, tpu.core_type = #tpu.core_type<tc>, window_params = [{transform_indices = @transform_0, window_bounds = array<i64: 16, 32>}, {transform_indices = @transform_1, window_bounds = array<i64: 32, 96>}, {transform_indices = @transform_2, window_bounds = array<i64: 1, 96>}, {transform_indices = @transform_3, window_bounds = array<i64: 16, 96>}]} {
    %c0_i32 = arith.constant 0 : i32
    %0 = arith.cmpi eq, %arg2, %c0_i32 : i32
    %1 = arith.extui %0 : i1 to i32
    %c0_i32_0 = arith.constant 0 : i32
    %2 = arith.cmpi ne, %1, %c0_i32_0 : i32
    scf.if %2 {
      %cst_10 = arith.constant 0.000000e+00 : f32
      %12 = vector.broadcast %cst_10 : f32 to vector<16x96xf32>
      %c0_11 = arith.constant 0 : index
      %c0_12 = arith.constant 0 : index
      %13 = vector.load %arg7[%c0_11, %c0_12] : memref<16x96xf32, #tpu.memory_space<vmem>>, vector<16x96xf32>
      tpu.vector_store %arg7[%c0_11, %c0_12], %12 {strides = array<i32>} : memref<16x96xf32, #tpu.memory_space<vmem>>, vector<16x96xf32>,
    } else {
    }
    %c0 = arith.constant 0 : index
    %c0_1 = arith.constant 0 : index
    %3 = vector.load %arg7[%c0, %c0_1] : memref<16x96xf32, #tpu.memory_space<vmem>>, vector<16x96xf32>
    %c0_2 = arith.constant 0 : index
    %c0_3 = arith.constant 0 : index
    %4 = vector.load %arg3[%c0_2, %c0_3] : memref<16x32xbf16, #tpu.memory_space<vmem>>, vector<16x32xbf16>
    %c0_4 = arith.constant 0 : index
    %c0_5 = arith.constant 0 : index
    %5 = vector.load %arg4[%c0_4, %c0_5] : memref<32x96xbf16, #tpu.memory_space<vmem>>, vector<32x96xbf16>
    %cst = arith.constant dense<0.000000e+00> : vector<16x96xf32>
    %6 = tpu.matmul %4, %5, %cst {dimension_numbers = #tpu.dot_dimension_numbers<[1], [0], [0], [1], [0, 0, 1, 1], [], []>} : vector<16x32xbf16>, vector<32x96xbf16>, vector<16x96xf32> -> vector<16x96xf32>
    %7 = arith.addf %3, %6 : vector<16x96xf32>
    %c0_6 = arith.constant 0 : index
    %c0_7 = arith.constant 0 : index
    %8 = vector.load %arg7[%c0_6, %c0_7] : memref<16x96xf32, #tpu.memory_space<vmem>>, vector<16x96xf32>
    tpu.vector_store %arg7[%c0_6, %c0_7], %7 {strides = array<i32>} : memref<16x96xf32, #tpu.memory_space<vmem>>, vector<16x96xf32>,
    %c0_i32_8 = arith.constant 0 : i32
    %9 = arith.cmpi eq, %arg2, %c0_i32_8 : i32
    %10 = arith.extui %9 : i1 to i32
    %c0_i32_9 = arith.constant 0 : i32
    %11 = arith.cmpi ne, %10, %c0_i32_9 : i32
    scf.if %11 {
      %c0_10 = arith.constant 0 : index
      %c0_11 = arith.constant 0 : index
      %12 = vector.load %arg7[%c0_10, %c0_11] : memref<16x96xf32, #tpu.memory_space<vmem>>, vector<16x96xf32>
      %c0_12 = arith.constant 0 : index
      %c0_13 = arith.constant 0 : index
      %13 = vector.load %arg5[%c0_12, %c0_13] : memref<1x96xf32, #tpu.memory_space<vmem>>, vector<1x96xf32>
      %14 = vector.broadcast %13 : vector<1x96xf32> to vector<16x96xf32>
      %15 = arith.addf %12, %14 : vector<16x96xf32>
      %16 = arith.truncf %15 : vector<16x96xf32> to vector<16x96xbf16>
      %c0_14 = arith.constant 0 : index
      %c0_15 = arith.constant 0 : index
      %17 = vector.load %arg6[%c0_14, %c0_15] : memref<16x96xbf16, #tpu.memory_space<vmem>>, vector<16x96xbf16>
      tpu.vector_store %arg6[%c0_14, %c0_15], %16 {strides = array<i32>} : memref<16x96xbf16, #tpu.memory_space<vmem>>, vector<16x96xbf16>,
    } else {
    }
    return
  }
  func.func @transform_0(%arg0: i32, %arg1: i32, %arg2: i32) -> (i32, i32) {
    %c0_i32 = arith.constant 0 : i32
    return %arg0, %arg2 : i32, i32
  }
  func.func @transform_1(%arg0: i32, %arg1: i32, %arg2: i32) -> (i32, i32) {
    %c0_i32 = arith.constant 0 : i32
    return %arg2, %arg1 : i32, i32
  }
  func.func @transform_2(%arg0: i32, %arg1: i32, %arg2: i32) -> (i32, i32) {
    %c0_i32 = arith.constant 0 : i32
    %c0_i32_0 = arith.constant 0 : i32
    return %c0_i32, %arg1 : i32, i32
  }
  func.func @transform_3(%arg0: i32, %arg1: i32, %arg2: i32) -> (i32, i32) {
    %c0_i32 = arith.constant 0 : i32
    return %arg0, %arg1 : i32, i32
  }
}

module attributes {stable_mosaic.version = 11 : i64} {
  func.func @_layernorm_kernel(%arg0: i32, %arg1: memref<16x32xbf16, #tpu.memory_space<vmem>>, %arg2: memref<1x32xf32, #tpu.memory_space<vmem>>, %arg3: memref<1x32xf32, #tpu.memory_space<vmem>>, %arg4: memref<16x32xbf16, #tpu.memory_space<vmem>>) attributes {dimension_semantics = [#tpu.dimension_semantics<parallel>], iteration_bounds = array<i64: 1>, scalar_prefetch = 0 : i64, scratch_operands = 0 : i64, tpu.core_type = #tpu.core_type<tc>, window_params = [{transform_indices = @transform_0, window_bounds = array<i64: 16, 32>}, {pipeline_mode = #tpu.pipeline_mode<synchronous>, transform_indices = @transform_1, window_bounds = array<i64: 1, 32>}, {pipeline_mode = #tpu.pipeline_mode<synchronous>, transform_indices = @transform_2, window_bounds = array<i64: 1, 32>}, {transform_indices = @transform_3, window_bounds = array<i64: 16, 32>}]} {
    %c0 = arith.constant 0 : index
    %c0_0 = arith.constant 0 : index
    %0 = vector.load %arg1[%c0, %c0_0] : memref<16x32xbf16, #tpu.memory_space<vmem>>, vector<16x32xbf16>
    %1 = arith.extf %0 : vector<16x32xbf16> to vector<16x32xf32>
    %cst = arith.constant dense<0.000000e+00> : vector<16xf32>
    %2 = vector.multi_reduction <add>, %1, %cst [1] : vector<16x32xf32> to vector<16xf32>
    %3 = vector.shape_cast %2 : vector<16xf32> to vector<16x1xf32>
    %cst_1 = arith.constant 3.200000e+01 : f32
    %4 = vector.broadcast %cst_1 : f32 to vector<16x1xf32>
    %5 = arith.divf %3, %4 : vector<16x1xf32>
    %6 = vector.broadcast %5 : vector<16x1xf32> to vector<16x32xf32>
    %7 = arith.subf %1, %6 : vector<16x32xf32>
    %8 = arith.mulf %7, %7 : vector<16x32xf32>
    %cst_2 = arith.constant dense<0.000000e+00> : vector<16xf32>
    %9 = vector.multi_reduction <add>, %8, %cst_2 [1] : vector<16x32xf32> to vector<16xf32>
    %10 = vector.shape_cast %9 : vector<16xf32> to vector<16x1xf32>
    %cst_3 = arith.constant 3.200000e+01 : f32
    %11 = vector.broadcast %cst_3 : f32 to vector<16x1xf32>
    %12 = arith.divf %10, %11 : vector<16x1xf32>
    %cst_4 = arith.constant 9.99999974E-6 : f32
    %13 = vector.broadcast %cst_4 : f32 to vector<16x1xf32>
    %14 = arith.addf %12, %13 : vector<16x1xf32>
    %15 = math.rsqrt %14 : vector<16x1xf32>
    %16 = vector.broadcast %15 : vector<16x1xf32> to vector<16x32xf32>
    %17 = arith.mulf %7, %16 : vector<16x32xf32>
    %c0_5 = arith.constant 0 : index
    %c0_6 = arith.constant 0 : index
    %18 = vector.load %arg2[%c0_5, %c0_6] : memref<1x32xf32, #tpu.memory_space<vmem>>, vector<1x32xf32>
    %19 = vector.broadcast %18 : vector<1x32xf32> to vector<16x32xf32>
    %20 = arith.mulf %17, %19 : vector<16x32xf32>
    %c0_7 = arith.constant 0 : index
    %c0_8 = arith.constant 0 : index
    %21 = vector.load %arg3[%c0_7, %c0_8] : memref<1x32xf32, #tpu.memory_space<vmem>>, vector<1x32xf32>
    %22 = vector.broadcast %21 : vector<1x32xf32> to vector<16x32xf32>
    %23 = arith.addf %20, %22 : vector<16x32xf32>
    %24 = arith.truncf %23 : vector<16x32xf32> to vector<16x32xbf16>
    %c0_9 = arith.constant 0 : index
    %c0_10 = arith.constant 0 : index
    %25 = vector.load %arg4[%c0_9, %c0_10] : memref<16x32xbf16, #tpu.memory_space<vmem>>, vector<16x32xbf16>
    tpu.vector_store %arg4[%c0_9, %c0_10], %24 {strides = array<i32>} : memref<16x32xbf16, #tpu.memory_space<vmem>>, vector<16x32xbf16>,
    return
  }
  func.func @transform_0(%arg0: i32) -> (i32, i32) {
    %c0_i32 = arith.constant 0 : i32
    %c0_i32_0 = arith.constant 0 : i32
    return %arg0, %c0_i32 : i32, i32
  }
  func.func @transform_1(%arg0: i32) -> (i32, i32) {
    %c0_i32 = arith.constant 0 : i32
    %c0_i32_0 = arith.constant 0 : i32
    %c0_i32_1 = arith.constant 0 : i32
    return %c0_i32, %c0_i32_0 : i32, i32
  }
  func.func @transform_2(%arg0: i32) -> (i32, i32) {
    %c0_i32 = arith.constant 0 : i32
    %c0_i32_0 = arith.constant 0 : i32
    %c0_i32_1 = arith.constant 0 : i32
    return %c0_i32, %c0_i32_0 : i32, i32
  }
  func.func @transform_3(%arg0: i32) -> (i32, i32) {
    %c0_i32 = arith.constant 0 : i32
    %c0_i32_0 = arith.constant 0 : i32
    return %arg0, %c0_i32 : i32, i32
  }
}

module attributes {stable_mosaic.version = 11 : i64} {
  func.func @_conv_tap_kernel(%arg0: i32, %arg1: i32, %arg2: i32, %arg3: i32, %arg4: memref<1x1x8x32xbf16, #tpu.memory_space<vmem>>, %arg5: memref<1x32x32xbf16, #tpu.memory_space<vmem>>, %arg6: memref<1x32xf32, #tpu.memory_space<vmem>>, %arg7: memref<8x32xf32, #tpu.memory_space<vmem>>, %arg8: memref<1x8x32xbf16, #tpu.memory_space<vmem>>, %arg9: memref<8x32xf32, #tpu.memory_space<vmem>>) attributes {dimension_semantics = [#tpu.dimension_semantics<parallel>, #tpu.dimension_semantics<parallel>, #tpu.dimension_semantics<parallel>, #tpu.dimension_semantics<arbitrary>], iteration_bounds = array<i64: 2, 1, 1, 3>, scalar_prefetch = 0 : i64, scratch_operands = 1 : i64, tpu.core_type = #tpu.core_type<tc>, window_params = [{transform_indices = @transform_0, window_bounds = array<i64: 1, 1, 8, 32>}, {transform_indices = @transform_1, window_bounds = array<i64: 1, 32, 32>}, {transform_indices = @transform_2, window_bounds = array<i64: 1, 32>}, {transform_indices = @transform_3, window_bounds = array<i64: 8, 32>}, {transform_indices = @transform_4, window_bounds = array<i64: 1, 8, 32>}]} {
    %c0_i32 = arith.constant 0 : i32
    %0 = arith.cmpi eq, %arg3, %c0_i32 : i32
    %1 = arith.extui %0 : i1 to i32
    %c0_i32_0 = arith.constant 0 : i32
    %2 = arith.cmpi ne, %1, %c0_i32_0 : i32
    scf.if %2 {
      %cst_12 = arith.constant 0.000000e+00 : f32
      %14 = vector.broadcast %cst_12 : f32 to vector<8x32xf32>
      %c0_13 = arith.constant 0 : index
      %c0_14 = arith.constant 0 : index
      %15 = vector.load %arg9[%c0_13, %c0_14] : memref<8x32xf32, #tpu.memory_space<vmem>>, vector<8x32xf32>
      tpu.vector_store %arg9[%c0_13, %c0_14], %14 {strides = array<i32>} : memref<8x32xf32, #tpu.memory_space<vmem>>, vector<8x32xf32>,
    } else {
    }
    %c0 = arith.constant 0 : index
    %c0_1 = arith.constant 0 : index
    %3 = vector.load %arg9[%c0, %c0_1] : memref<8x32xf32, #tpu.memory_space<vmem>>, vector<8x32xf32>
    %c0_2 = arith.constant 0 : index
    %c0_3 = arith.constant 0 : index
    %c0_4 = arith.constant 0 : index
    %c0_5 = arith.constant 0 : index
    %4 = vector.load %arg4[%c0_2, %c0_3, %c0_4, %c0_5] : memref<1x1x8x32xbf16, #tpu.memory_space<vmem>>, vector<1x1x8x32xbf16>
    %5 = vector.shape_cast %4 : vector<1x1x8x32xbf16> to vector<8x32xbf16>
    %c0_6 = arith.constant 0 : index
    %c0_7 = arith.constant 0 : index
    %c0_8 = arith.constant 0 : index
    %6 = vector.load %arg5[%c0_6, %c0_7, %c0_8] : memref<1x32x32xbf16, #tpu.memory_space<vmem>>, vector<1x32x32xbf16>
    %7 = vector.shape_cast %6 : vector<1x32x32xbf16> to vector<32x32xbf16>
    %cst = arith.constant dense<0.000000e+00> : vector<8x32xf32>
    %8 = tpu.matmul %5, %7, %cst {dimension_numbers = #tpu.dot_dimension_numbers<[1], [0], [0], [1], [0, 0, 1, 1], [], []>} : vector<8x32xbf16>, vector<32x32xbf16>, vector<8x32xf32> -> vector<8x32xf32>
    %9 = arith.addf %3, %8 : vector<8x32xf32>
    %c0_9 = arith.constant 0 : index
    %c0_10 = arith.constant 0 : index
    %10 = vector.load %arg9[%c0_9, %c0_10] : memref<8x32xf32, #tpu.memory_space<vmem>>, vector<8x32xf32>
    tpu.vector_store %arg9[%c0_9, %c0_10], %9 {strides = array<i32>} : memref<8x32xf32, #tpu.memory_space<vmem>>, vector<8x32xf32>,
    %c2_i32 = arith.constant 2 : i32
    %11 = arith.cmpi eq, %arg3, %c2_i32 : i32
    %12 = arith.extui %11 : i1 to i32
    %c0_i32_11 = arith.constant 0 : i32
    %13 = arith.cmpi ne, %12, %c0_i32_11 : i32
    scf.if %13 {
      %c0_12 = arith.constant 0 : index
      %c0_13 = arith.constant 0 : index
      %14 = vector.load %arg9[%c0_12, %c0_13] : memref<8x32xf32, #tpu.memory_space<vmem>>, vector<8x32xf32>
      %c0_14 = arith.constant 0 : index
      %c0_15 = arith.constant 0 : index
      %15 = vector.load %arg6[%c0_14, %c0_15] : memref<1x32xf32, #tpu.memory_space<vmem>>, vector<1x32xf32>
      %16 = vector.broadcast %15 : vector<1x32xf32> to vector<8x32xf32>
      %17 = arith.addf %14, %16 : vector<8x32xf32>
      %cst_16 = arith.constant 5.000000e-01 : f32
      %18 = vector.broadcast %cst_16 : f32 to vector<8x32xf32>
      %19 = arith.mulf %18, %17 : vector<8x32xf32>
      %cst_17 = arith.constant 0.707106769 : f32
      %20 = vector.broadcast %cst_17 : f32 to vector<8x32xf32>
      %21 = arith.mulf %17, %20 : vector<8x32xf32>
      %22 = math.erf %21 : vector<8x32xf32>
      %cst_18 = arith.constant 1.000000e+00 : f32
      %23 = vector.broadcast %cst_18 : f32 to vector<8x32xf32>
      %24 = arith.addf %23, %22 : vector<8x32xf32>
      %25 = arith.mulf %19, %24 : vector<8x32xf32>
      %c0_19 = arith.constant 0 : index
      %c0_20 = arith.constant 0 : index
      %26 = vector.load %arg7[%c0_19, %c0_20] : memref<8x32xf32, #tpu.memory_space<vmem>>, vector<8x32xf32>
      %27 = arith.addf %25, %26 : vector<8x32xf32>
      %28 = arith.truncf %27 : vector<8x32xf32> to vector<8x32xbf16>
      %c0_21 = arith.constant 0 : index
      %c0_22 = arith.constant 0 : index
      %c0_23 = arith.constant 0 : index
      %29 = vector.load %arg8[%c0_21, %c0_22, %c0_23] : memref<1x8x32xbf16, #tpu.memory_space<vmem>>, vector<1x8x32xbf16>
      %30 = vector.shape_cast %29 : vector<1x8x32xbf16> to vector<8x32xbf16>
      %31 = vector.shape_cast %28 : vector<8x32xbf16> to vector<1x8x32xbf16>
      tpu.vector_store %arg8[%c0_21, %c0_22, %c0_23], %31 {strides = array<i32>} : memref<1x8x32xbf16, #tpu.memory_space<vmem>>, vector<1x8x32xbf16>,
    } else {
    }
    return
  }
  func.func @transform_0(%arg0: i32, %arg1: i32, %arg2: i32, %arg3: i32) -> (i32, i32, i32, i32) {
    %c0_i32 = arith.constant 0 : i32
    %c0_i32_0 = arith.constant 0 : i32
    return %arg3, %arg0, %arg1, %c0_i32 : i32, i32, i32, i32
  }
  func.func @transform_1(%arg0: i32, %arg1: i32, %arg2: i32, %arg3: i32) -> (i32, i32, i32) {
    %c0_i32 = arith.constant 0 : i32
    %c0_i32_0 = arith.constant 0 : i32
    return %arg3, %c0_i32, %arg2 : i32, i32, i32
  }
  func.func @transform_2(%arg0: i32, %arg1: i32, %arg2: i32, %arg3: i32) -> (i32, i32) {
    %c0_i32 = arith.constant 0 : i32
    %c0_i32_0 = arith.constant 0 : i32
    return %c0_i32, %arg2 : i32, i32
  }
  func.func @transform_3(%arg0: i32, %arg1: i32, %arg2: i32, %arg3: i32) -> (i32, i32) {
    %c0_i32 = arith.constant 0 : i32
    return %arg1, %arg2 : i32, i32
  }
  func.func @transform_4(%arg0: i32, %arg1: i32, %arg2: i32, %arg3: i32) -> (i32, i32, i32) {
    %c0_i32 = arith.constant 0 : i32
    return %arg0, %arg1, %arg2 : i32, i32, i32
  }
}

module attributes {stable_mosaic.version = 11 : i64} {
  func.func @_flash_attn_kernel(%arg0: i32, %arg1: i32, %arg2: i32, %arg3: memref<1x8x8xbf16, #tpu.memory_space<vmem>>, %arg4: memref<1x8x8xbf16, #tpu.memory_space<vmem>>, %arg5: memref<1x8x8xbf16, #tpu.memory_space<vmem>>, %arg6: memref<1x8x8xbf16, #tpu.memory_space<vmem>>, %arg7: memref<8x1xf32, #tpu.memory_space<vmem>>, %arg8: memref<8x1xf32, #tpu.memory_space<vmem>>, %arg9: memref<8x8xf32, #tpu.memory_space<vmem>>) attributes {dimension_semantics = [#tpu.dimension_semantics<parallel>, #tpu.dimension_semantics<parallel>, #tpu.dimension_semantics<arbitrary>], iteration_bounds = array<i64: 8, 1, 1>, scalar_prefetch = 0 : i64, scratch_operands = 3 : i64, tpu.core_type = #tpu.core_type<tc>, window_params = [{transform_indices = @transform_0, window_bounds = array<i64: 1, 8, 8>}, {transform_indices = @transform_1, window_bounds = array<i64: 1, 8, 8>}, {transform_indices = @transform_2, window_bounds = array<i64: 1, 8, 8>}, {transform_indices = @transform_3, window_bounds = array<i64: 1, 8, 8>}]} {
    %c0_i32 = arith.constant 0 : i32
    %0 = arith.cmpi eq, %arg2, %c0_i32 : i32
    %1 = arith.extui %0 : i1 to i32
    %c0_i32_0 = arith.constant 0 : i32
    %2 = arith.cmpi ne, %1, %c0_i32_0 : i32
    scf.if %2 {
      %cst_27 = arith.constant 0xFF800000 : f32
      %38 = vector.broadcast %cst_27 : f32 to vector<8x1xf32>
      %c0_28 = arith.constant 0 : index
      %c0_29 = arith.constant 0 : index
      %39 = vector.load %arg7[%c0_28, %c0_29] : memref<8x1xf32, #tpu.memory_space<vmem>>, vector<8x1xf32>
      tpu.vector_store %arg7[%c0_28, %c0_29], %38 {strides = array<i32>} : memref<8x1xf32, #tpu.memory_space<vmem>>, vector<8x1xf32>,
      %cst_30 = arith.constant 0.000000e+00 : f32
      %40 = vector.broadcast %cst_30 : f32 to vector<8x1xf32>
      %c0_31 = arith.constant 0 : index
      %c0_32 = arith.constant 0 : index
      %41 = vector.load %arg8[%c0_31, %c0_32] : memref<8x1xf32, #tpu.memory_space<vmem>>, vector<8x1xf32>
      tpu.vector_store %arg8[%c0_31, %c0_32], %40 {strides = array<i32>} : memref<8x1xf32, #tpu.memory_space<vmem>>, vector<8x1xf32>,
      %cst_33 = arith.constant 0.000000e+00 : f32
      %42 = vector.broadcast %cst_33 : f32 to vector<8x8xf32>
      %c0_34 = arith.constant 0 : index
      %c0_35 = arith.constant 0 : index
      %43 = vector.load %arg9[%c0_34, %c0_35] : memref<8x8xf32, #tpu.memory_space<vmem>>, vector<8x8xf32>
      tpu.vector_store %arg9[%c0_34, %c0_35], %42 {strides = array<i32>} : memref<8x8xf32, #tpu.memory_space<vmem>>, vector<8x8xf32>,
    } else {
    }
    %c0 = arith.constant 0 : index
    %c0_1 = arith.constant 0 : index
    %c0_2 = arith.constant 0 : index
    %3 = vector.load %arg3[%c0, %c0_1, %c0_2] : memref<1x8x8xbf16, #tpu.memory_space<vmem>>, vector<1x8x8xbf16>
    %4 = vector.shape_cast %3 : vector<1x8x8xbf16> to vector<8x8xbf16>
    %c0_3 = arith.constant 0 : index
    %c0_4 = arith.constant 0 : index
    %c0_5 = arith.constant 0 : index
    %5 = vector.load %arg4[%c0_3, %c0_4, %c0_5] : memref<1x8x8xbf16, #tpu.memory_space<vmem>>, vector<1x8x8xbf16>
    %6 = vector.shape_cast %5 : vector<1x8x8xbf16> to vector<8x8xbf16>
    %cst = arith.constant dense<0.000000e+00> : vector<8x8xf32>
    %7 = tpu.matmul %4, %6, %cst {dimension_numbers = #tpu.dot_dimension_numbers<[1], [1], [0], [0], [0, 0, 1, 0], [], []>} : vector<8x8xbf16>, vector<8x8xbf16>, vector<8x8xf32> -> vector<8x8xf32>
    %cst_6 = arith.constant 0.353553385 : f32
    %8 = vector.broadcast %cst_6 : f32 to vector<8x8xf32>
    %9 = arith.mulf %7, %8 : vector<8x8xf32>
    %c0_7 = arith.constant 0 : index
    %c0_8 = arith.constant 0 : index
    %10 = vector.load %arg7[%c0_7, %c0_8] : memref<8x1xf32, #tpu.memory_space<vmem>>, vector<8x1xf32>
    %cst_9 = arith.constant dense<0xFF800000> : vector<8xf32>
    %11 = vector.multi_reduction <maximumf>, %9, %cst_9 [1] : vector<8x8xf32> to vector<8xf32>
    %12 = vector.shape_cast %11 : vector<8xf32> to vector<8x1xf32>
    %13 = arith.maximumf %10, %12 : vector<8x1xf32>
    %14 = arith.subf %10, %13 : vector<8x1xf32>
    %15 = math.exp %14 : vector<8x1xf32>
    %16 = vector.broadcast %13 : vector<8x1xf32> to vector<8x8xf32>
    %17 = arith.subf %9, %16 : vector<8x8xf32>
    %18 = math.exp %17 : vector<8x8xf32>
    %c0_10 = arith.constant 0 : index
    %c0_11 = arith.constant 0 : index
    %19 = vector.load %arg8[%c0_10, %c0_11] : memref<8x1xf32, #tpu.memory_space<vmem>>, vector<8x1xf32>
    %20 = arith.mulf %15, %19 : vector<8x1xf32>
    %cst_12 = arith.constant dense<0.000000e+00> : vector<8xf32>
    %21 = vector.multi_reduction <add>, %18, %cst_12 [1] : vector<8x8xf32> to vector<8xf32>
    %22 = vector.shape_cast %21 : vector<8xf32> to vector<8x1xf32>
    %23 = arith.addf %20, %22 : vector<8x1xf32>
    %c0_13 = arith.constant 0 : index
    %c0_14 = arith.constant 0 : index
    %24 = vector.load %arg8[%c0_13, %c0_14] : memref<8x1xf32, #tpu.memory_space<vmem>>, vector<8x1xf32>
    tpu.vector_store %arg8[%c0_13, %c0_14], %23 {strides = array<i32>} : memref<8x1xf32, #tpu.memory_space<vmem>>, vector<8x1xf32>,
    %c0_15 = arith.constant 0 : index
    %c0_16 = arith.constant 0 : index
    %25 = vector.load %arg9[%c0_15, %c0_16] : memref<8x8xf32, #tpu.memory_space<vmem>>, vector<8x8xf32>
    %26 = vector.broadcast %15 : vector<8x1xf32> to vector<8x8xf32>
    %27 = arith.mulf %26, %25 : vector<8x8xf32>
    %28 = arith.truncf %18 : vector<8x8xf32> to vector<8x8xbf16>
    %c0_17 = arith.constant 0 : index
    %c0_18 = arith.constant 0 : index
    %c0_19 = arith.constant 0 : index
    %29 = vector.load %arg5[%c0_17, %c0_18, %c0_19] : memref<1x8x8xbf16, #tpu.memory_space<vmem>>, vector<1x8x8xbf16>
    %30 = vector.shape_cast %29 : vector<1x8x8xbf16> to vector<8x8xbf16>
    %cst_20 = arith.constant dense<0.000000e+00> : vector<8x8xf32>
    %31 = tpu.matmul %28, %30, %cst_20 {dimension_numbers = #tpu.dot_dimension_numbers<[1], [0], [0], [1], [0, 0, 1, 1], [], []>} : vector<8x8xbf16>, vector<8x8xbf16>, vector<8x8xf32> -> vector<8x8xf32>
    %32 = arith.addf %27, %31 : vector<8x8xf32>
    %c0_21 = arith.constant 0 : index
    %c0_22 = arith.constant 0 : index
    %33 = vector.load %arg9[%c0_21, %c0_22] : memref<8x8xf32, #tpu.memory_space<vmem>>, vector<8x8xf32>
    tpu.vector_store %arg9[%c0_21, %c0_22], %32 {strides = array<i32>} : memref<8x8xf32, #tpu.memory_space<vmem>>, vector<8x8xf32>,
    %c0_23 = arith.constant 0 : index
    %c0_24 = arith.constant 0 : index
    %34 = vector.load %arg7[%c0_23, %c0_24] : memref<8x1xf32, #tpu.memory_space<vmem>>, vector<8x1xf32>
    tpu.vector_store %arg7[%c0_23, %c0_24], %13 {strides = array<i32>} : memref<8x1xf32, #tpu.memory_space<vmem>>, vector<8x1xf32>,
    %c0_i32_25 = arith.constant 0 : i32
    %35 = arith.cmpi eq, %arg2, %c0_i32_25 : i32
    %36 = arith.extui %35 : i1 to i32
    %c0_i32_26 = arith.constant 0 : i32
    %37 = arith.cmpi ne, %36, %c0_i32_26 : i32
    scf.if %37 {
      %c0_27 = arith.constant 0 : index
      %c0_28 = arith.constant 0 : index
      %38 = vector.load %arg8[%c0_27, %c0_28] : memref<8x1xf32, #tpu.memory_space<vmem>>, vector<8x1xf32>
      %39 = tpu.reciprocal %38 {approx = true} : vector<8x1xf32> -> vector<8x1xf32>
      %c0_29 = arith.constant 0 : index
      %c0_30 = arith.constant 0 : index
      %40 = vector.load %arg9[%c0_29, %c0_30] : memref<8x8xf32, #tpu.memory_space<vmem>>, vector<8x8xf32>
      %41 = vector.broadcast %39 : vector<8x1xf32> to vector<8x8xf32>
      %42 = arith.mulf %40, %41 : vector<8x8xf32>
      %43 = arith.truncf %42 : vector<8x8xf32> to vector<8x8xbf16>
      %c0_31 = arith.constant 0 : index
      %c0_32 = arith.constant 0 : index
      %c0_33 = arith.constant 0 : index
      %44 = vector.load %arg6[%c0_31, %c0_32, %c0_33] : memref<1x8x8xbf16, #tpu.memory_space<vmem>>, vector<1x8x8xbf16>
      %45 = vector.shape_cast %44 : vector<1x8x8xbf16> to vector<8x8xbf16>
      %46 = vector.shape_cast %43 : vector<8x8xbf16> to vector<1x8x8xbf16>
      tpu.vector_store %arg6[%c0_31, %c0_32, %c0_33], %46 {strides = array<i32>} : memref<1x8x8xbf16, #tpu.memory_space<vmem>>, vector<1x8x8xbf16>,
    } else {
    }
    return
  }
  func.func @transform_0(%arg0: i32, %arg1: i32, %arg2: i32) -> (i32, i32, i32) {
    %c0_i32 = arith.constant 0 : i32
    %c0_i32_0 = arith.constant 0 : i32
    return %arg0, %arg1, %c0_i32 : i32, i32, i32
  }
  func.func @transform_1(%arg0: i32, %arg1: i32, %arg2: i32) -> (i32, i32, i32) {
    %c0_i32 = arith.constant 0 : i32
    %c0_i32_0 = arith.constant 0 : i32
    return %arg0, %arg2, %c0_i32 : i32, i32, i32
  }
  func.func @transform_2(%arg0: i32, %arg1: i32, %arg2: i32) -> (i32, i32, i32) {
    %c0_i32 = arith.constant 0 : i32
    %c0_i32_0 = arith.constant 0 : i32
    return %arg0, %arg2, %c0_i32 : i32, i32, i32
  }
  func.func @transform_3(%arg0: i32, %arg1: i32, %arg2: i32) -> (i32, i32, i32) {
    %c0_i32 = arith.constant 0 : i32
    %c0_i32_0 = arith.constant 0 : i32
    return %arg0, %arg1, %c0_i32 : i32, i32, i32
  }
}

module attributes {stable_mosaic.version = 11 : i64} {
  func.func @_linear_kernel(%arg0: i32, %arg1: i32, %arg2: i32, %arg3: memref<16x32xbf16, #tpu.memory_space<vmem>>, %arg4: memref<32x32xbf16, #tpu.memory_space<vmem>>, %arg5: memref<1x32xf32, #tpu.memory_space<vmem>>, %arg6: memref<16x32xbf16, #tpu.memory_space<vmem>>, %arg7: memref<16x32xbf16, #tpu.memory_space<vmem>>, %arg8: memref<16x32xf32, #tpu.memory_space<vmem>>) attributes {dimension_semantics = [#tpu.dimension_semantics<parallel>, #tpu.dimension_semantics<parallel>, #tpu.dimension_semantics<arbitrary>], iteration_bounds = array<i64: 1, 1, 1>, scalar_prefetch = 0 : i64, scratch_operands = 1 : i64, tpu.core_type = #tpu.core_type<tc>, window_params = [{transform_indices = @transform_0, window_bounds = array<i64: 16, 32>}, {transform_indices = @transform_1, window_bounds = array<i64: 32, 32>}, {transform_indices = @transform_2, window_bounds = array<i64: 1, 32>}, {transform_indices = @transform_3, window_bounds = array<i64: 16, 32>}, {transform_indices = @transform_4, window_bounds = array<i64: 16, 32>}]} {
    %c0_i32 = arith.constant 0 : i32
    %0 = arith.cmpi eq, %arg2, %c0_i32 : i32
    %1 = arith.extui %0 : i1 to i32
    %c0_i32_0 = arith.constant 0 : i32
    %2 = arith.cmpi ne, %1, %c0_i32_0 : i32
    scf.if %2 {
      %cst_10 = arith.constant 0.000000e+00 : f32
      %12 = vector.broadcast %cst_10 : f32 to vector<16x32xf32>
      %c0_11 = arith.constant 0 : index
      %c0_12 = arith.constant 0 : index
      %13 = vector.load %arg8[%c0_11, %c0_12] : memref<16x32xf32, #tpu.memory_space<vmem>>, vector<16x32xf32>
      tpu.vector_store %arg8[%c0_11, %c0_12], %12 {strides = array<i32>} : memref<16x32xf32, #tpu.memory_space<vmem>>, vector<16x32xf32>,
    } else {
    }
    %c0 = arith.constant 0 : index
    %c0_1 = arith.constant 0 : index
    %3 = vector.load %arg8[%c0, %c0_1] : memref<16x32xf32, #tpu.memory_space<vmem>>, vector<16x32xf32>
    %c0_2 = arith.constant 0 : index
    %c0_3 = arith.constant 0 : index
    %4 = vector.load %arg3[%c0_2, %c0_3] : memref<16x32xbf16, #tpu.memory_space<vmem>>, vector<16x32xbf16>
    %c0_4 = arith.constant 0 : index
    %c0_5 = arith.constant 0 : index
    %5 = vector.load %arg4[%c0_4, %c0_5] : memref<32x32xbf16, #tpu.memory_space<vmem>>, vector<32x32xbf16>
    %cst = arith.constant dense<0.000000e+00> : vector<16x32xf32>
    %6 = tpu.matmul %4, %5, %cst {dimension_numbers = #tpu.dot_dimension_numbers<[1], [0], [0], [1], [0, 0, 1, 1], [], []>} : vector<16x32xbf16>, vector<32x32xbf16>, vector<16x32xf32> -> vector<16x32xf32>
    %7 = arith.addf %3, %6 : vector<16x32xf32>
    %c0_6 = arith.constant 0 : index
    %c0_7 = arith.constant 0 : index
    %8 = vector.load %arg8[%c0_6, %c0_7] : memref<16x32xf32, #tpu.memory_space<vmem>>, vector<16x32xf32>
    tpu.vector_store %arg8[%c0_6, %c0_7], %7 {strides = array<i32>} : memref<16x32xf32, #tpu.memory_space<vmem>>, vector<16x32xf32>,
    %c0_i32_8 = arith.constant 0 : i32
    %9 = arith.cmpi eq, %arg2, %c0_i32_8 : i32
    %10 = arith.extui %9 : i1 to i32
    %c0_i32_9 = arith.constant 0 : i32
    %11 = arith.cmpi ne, %10, %c0_i32_9 : i32
    scf.if %11 {
      %c0_10 = arith.constant 0 : index
      %c0_11 = arith.constant 0 : index
      %12 = vector.load %arg8[%c0_10, %c0_11] : memref<16x32xf32, #tpu.memory_space<vmem>>, vector<16x32xf32>
      %c0_12 = arith.constant 0 : index
      %c0_13 = arith.constant 0 : index
      %13 = vector.load %arg5[%c0_12, %c0_13] : memref<1x32xf32, #tpu.memory_space<vmem>>, vector<1x32xf32>
      %14 = vector.broadcast %13 : vector<1x32xf32> to vector<16x32xf32>
      %15 = arith.addf %12, %14 : vector<16x32xf32>
      %c0_14 = arith.constant 0 : index
      %c0_15 = arith.constant 0 : index
      %16 = vector.load %arg6[%c0_14, %c0_15] : memref<16x32xbf16, #tpu.memory_space<vmem>>, vector<16x32xbf16>
      %17 = arith.extf %16 : vector<16x32xbf16> to vector<16x32xf32>
      %18 = arith.addf %15, %17 : vector<16x32xf32>
      %19 = arith.truncf %18 : vector<16x32xf32> to vector<16x32xbf16>
      %c0_16 = arith.constant 0 : index
      %c0_17 = arith.constant 0 : index
      %20 = vector.load %arg7[%c0_16, %c0_17] : memref<16x32xbf16, #tpu.memory_space<vmem>>, vector<16x32xbf16>
      tpu.vector_store %arg7[%c0_16, %c0_17], %19 {strides = array<i32>} : memref<16x32xbf16, #tpu.memory_space<vmem>>, vector<16x32xbf16>,
    } else {
    }
    return
  }
  func.func @transform_0(%arg0: i32, %arg1: i32, %arg2: i32) -> (i32, i32) {
    %c0_i32 = arith.constant 0 : i32
    return %arg0, %arg2 : i32, i32
  }
  func.func @transform_1(%arg0: i32, %arg1: i32, %arg2: i32) -> (i32, i32) {
    %c0_i32 = arith.constant 0 : i32
    return %arg2, %arg1 : i32, i32
  }
  func.func @transform_2(%arg0: i32, %arg1: i32, %arg2: i32) -> (i32, i32) {
    %c0_i32 = arith.constant 0 : i32
    %c0_i32_0 = arith.constant 0 : i32
    return %c0_i32, %arg1 : i32, i32
  }
  func.func @transform_3(%arg0: i32, %arg1: i32, %arg2: i32) -> (i32, i32) {
    %c0_i32 = arith.constant 0 : i32
    return %arg0, %arg1 : i32, i32
  }
  func.func @transform_4(%arg0: i32, %arg1: i32, %arg2: i32) -> (i32, i32) {
    %c0_i32 = arith.constant 0 : i32
    return %arg0, %arg1 : i32, i32
  }
}

module attributes {stable_mosaic.version = 11 : i64} {
  func.func @_linear_kernel(%arg0: i32, %arg1: i32, %arg2: i32, %arg3: memref<16x32xbf16, #tpu.memory_space<vmem>>, %arg4: memref<32x64xbf16, #tpu.memory_space<vmem>>, %arg5: memref<1x64xf32, #tpu.memory_space<vmem>>, %arg6: memref<16x64xbf16, #tpu.memory_space<vmem>>, %arg7: memref<16x64xf32, #tpu.memory_space<vmem>>) attributes {dimension_semantics = [#tpu.dimension_semantics<parallel>, #tpu.dimension_semantics<parallel>, #tpu.dimension_semantics<arbitrary>], iteration_bounds = array<i64: 1, 1, 1>, scalar_prefetch = 0 : i64, scratch_operands = 1 : i64, tpu.core_type = #tpu.core_type<tc>, window_params = [{transform_indices = @transform_0, window_bounds = array<i64: 16, 32>}, {transform_indices = @transform_1, window_bounds = array<i64: 32, 64>}, {transform_indices = @transform_2, window_bounds = array<i64: 1, 64>}, {transform_indices = @transform_3, window_bounds = array<i64: 16, 64>}]} {
    %c0_i32 = arith.constant 0 : i32
    %0 = arith.cmpi eq, %arg2, %c0_i32 : i32
    %1 = arith.extui %0 : i1 to i32
    %c0_i32_0 = arith.constant 0 : i32
    %2 = arith.cmpi ne, %1, %c0_i32_0 : i32
    scf.if %2 {
      %cst_10 = arith.constant 0.000000e+00 : f32
      %12 = vector.broadcast %cst_10 : f32 to vector<16x64xf32>
      %c0_11 = arith.constant 0 : index
      %c0_12 = arith.constant 0 : index
      %13 = vector.load %arg7[%c0_11, %c0_12] : memref<16x64xf32, #tpu.memory_space<vmem>>, vector<16x64xf32>
      tpu.vector_store %arg7[%c0_11, %c0_12], %12 {strides = array<i32>} : memref<16x64xf32, #tpu.memory_space<vmem>>, vector<16x64xf32>,
    } else {
    }
    %c0 = arith.constant 0 : index
    %c0_1 = arith.constant 0 : index
    %3 = vector.load %arg7[%c0, %c0_1] : memref<16x64xf32, #tpu.memory_space<vmem>>, vector<16x64xf32>
    %c0_2 = arith.constant 0 : index
    %c0_3 = arith.constant 0 : index
    %4 = vector.load %arg3[%c0_2, %c0_3] : memref<16x32xbf16, #tpu.memory_space<vmem>>, vector<16x32xbf16>
    %c0_4 = arith.constant 0 : index
    %c0_5 = arith.constant 0 : index
    %5 = vector.load %arg4[%c0_4, %c0_5] : memref<32x64xbf16, #tpu.memory_space<vmem>>, vector<32x64xbf16>
    %cst = arith.constant dense<0.000000e+00> : vector<16x64xf32>
    %6 = tpu.matmul %4, %5, %cst {dimension_numbers = #tpu.dot_dimension_numbers<[1], [0], [0], [1], [0, 0, 1, 1], [], []>} : vector<16x32xbf16>, vector<32x64xbf16>, vector<16x64xf32> -> vector<16x64xf32>
    %7 = arith.addf %3, %6 : vector<16x64xf32>
    %c0_6 = arith.constant 0 : index
    %c0_7 = arith.constant 0 : index
    %8 = vector.load %arg7[%c0_6, %c0_7] : memref<16x64xf32, #tpu.memory_space<vmem>>, vector<16x64xf32>
    tpu.vector_store %arg7[%c0_6, %c0_7], %7 {strides = array<i32>} : memref<16x64xf32, #tpu.memory_space<vmem>>, vector<16x64xf32>,
    %c0_i32_8 = arith.constant 0 : i32
    %9 = arith.cmpi eq, %arg2, %c0_i32_8 : i32
    %10 = arith.extui %9 : i1 to i32
    %c0_i32_9 = arith.constant 0 : i32
    %11 = arith.cmpi ne, %10, %c0_i32_9 : i32
    scf.if %11 {
      %c0_10 = arith.constant 0 : index
      %c0_11 = arith.constant 0 : index
      %12 = vector.load %arg7[%c0_10, %c0_11] : memref<16x64xf32, #tpu.memory_space<vmem>>, vector<16x64xf32>
      %c0_12 = arith.constant 0 : index
      %c0_13 = arith.constant 0 : index
      %13 = vector.load %arg5[%c0_12, %c0_13] : memref<1x64xf32, #tpu.memory_space<vmem>>, vector<1x64xf32>
      %14 = vector.broadcast %13 : vector<1x64xf32> to vector<16x64xf32>
      %15 = arith.addf %12, %14 : vector<16x64xf32>
      %cst_14 = arith.constant 5.000000e-01 : f32
      %16 = vector.broadcast %cst_14 : f32 to vector<16x64xf32>
      %17 = arith.mulf %16, %15 : vector<16x64xf32>
      %cst_15 = arith.constant 0.707106769 : f32
      %18 = vector.broadcast %cst_15 : f32 to vector<16x64xf32>
      %19 = arith.mulf %15, %18 : vector<16x64xf32>
      %20 = math.erf %19 : vector<16x64xf32>
      %cst_16 = arith.constant 1.000000e+00 : f32
      %21 = vector.broadcast %cst_16 : f32 to vector<16x64xf32>
      %22 = arith.addf %21, %20 : vector<16x64xf32>
      %23 = arith.mulf %17, %22 : vector<16x64xf32>
      %24 = arith.truncf %23 : vector<16x64xf32> to vector<16x64xbf16>
      %c0_17 = arith.constant 0 : index
      %c0_18 = arith.constant 0 : index
      %25 = vector.load %arg6[%c0_17, %c0_18] : memref<16x64xbf16, #tpu.memory_space<vmem>>, vector<16x64xbf16>
      tpu.vector_store %arg6[%c0_17, %c0_18], %24 {strides = array<i32>} : memref<16x64xbf16, #tpu.memory_space<vmem>>, vector<16x64xbf16>,
    } else {
    }
    return
  }
  func.func @transform_0(%arg0: i32, %arg1: i32, %arg2: i32) -> (i32, i32) {
    %c0_i32 = arith.constant 0 : i32
    return %arg0, %arg2 : i32, i32
  }
  func.func @transform_1(%arg0: i32, %arg1: i32, %arg2: i32) -> (i32, i32) {
    %c0_i32 = arith.constant 0 : i32
    return %arg2, %arg1 : i32, i32
  }
  func.func @transform_2(%arg0: i32, %arg1: i32, %arg2: i32) -> (i32, i32) {
    %c0_i32 = arith.constant 0 : i32
    %c0_i32_0 = arith.constant 0 : i32
    return %c0_i32, %arg1 : i32, i32
  }
  func.func @transform_3(%arg0: i32, %arg1: i32, %arg2: i32) -> (i32, i32) {
    %c0_i32 = arith.constant 0 : i32
    return %arg0, %arg1 : i32, i32
  }
}

module attributes {stable_mosaic.version = 11 : i64} {
  func.func @_linear_kernel(%arg0: i32, %arg1: i32, %arg2: i32, %arg3: memref<16x64xbf16, #tpu.memory_space<vmem>>, %arg4: memref<64x32xbf16, #tpu.memory_space<vmem>>, %arg5: memref<1x32xf32, #tpu.memory_space<vmem>>, %arg6: memref<16x32xbf16, #tpu.memory_space<vmem>>, %arg7: memref<16x32xbf16, #tpu.memory_space<vmem>>, %arg8: memref<16x32xf32, #tpu.memory_space<vmem>>) attributes {dimension_semantics = [#tpu.dimension_semantics<parallel>, #tpu.dimension_semantics<parallel>, #tpu.dimension_semantics<arbitrary>], iteration_bounds = array<i64: 1, 1, 1>, scalar_prefetch = 0 : i64, scratch_operands = 1 : i64, tpu.core_type = #tpu.core_type<tc>, window_params = [{transform_indices = @transform_0, window_bounds = array<i64: 16, 64>}, {transform_indices = @transform_1, window_bounds = array<i64: 64, 32>}, {transform_indices = @transform_2, window_bounds = array<i64: 1, 32>}, {transform_indices = @transform_3, window_bounds = array<i64: 16, 32>}, {transform_indices = @transform_4, window_bounds = array<i64: 16, 32>}]} {
    %c0_i32 = arith.constant 0 : i32
    %0 = arith.cmpi eq, %arg2, %c0_i32 : i32
    %1 = arith.extui %0 : i1 to i32
    %c0_i32_0 = arith.constant 0 : i32
    %2 = arith.cmpi ne, %1, %c0_i32_0 : i32
    scf.if %2 {
      %cst_10 = arith.constant 0.000000e+00 : f32
      %12 = vector.broadcast %cst_10 : f32 to vector<16x32xf32>
      %c0_11 = arith.constant 0 : index
      %c0_12 = arith.constant 0 : index
      %13 = vector.load %arg8[%c0_11, %c0_12] : memref<16x32xf32, #tpu.memory_space<vmem>>, vector<16x32xf32>
      tpu.vector_store %arg8[%c0_11, %c0_12], %12 {strides = array<i32>} : memref<16x32xf32, #tpu.memory_space<vmem>>, vector<16x32xf32>,
    } else {
    }
    %c0 = arith.constant 0 : index
    %c0_1 = arith.constant 0 : index
    %3 = vector.load %arg8[%c0, %c0_1] : memref<16x32xf32, #tpu.memory_space<vmem>>, vector<16x32xf32>
    %c0_2 = arith.constant 0 : index
    %c0_3 = arith.constant 0 : index
    %4 = vector.load %arg3[%c0_2, %c0_3] : memref<16x64xbf16, #tpu.memory_space<vmem>>, vector<16x64xbf16>
    %c0_4 = arith.constant 0 : index
    %c0_5 = arith.constant 0 : index
    %5 = vector.load %arg4[%c0_4, %c0_5] : memref<64x32xbf16, #tpu.memory_space<vmem>>, vector<64x32xbf16>
    %cst = arith.constant dense<0.000000e+00> : vector<16x32xf32>
    %6 = tpu.matmul %4, %5, %cst {dimension_numbers = #tpu.dot_dimension_numbers<[1], [0], [0], [1], [0, 0, 1, 1], [], []>} : vector<16x64xbf16>, vector<64x32xbf16>, vector<16x32xf32> -> vector<16x32xf32>
    %7 = arith.addf %3, %6 : vector<16x32xf32>
    %c0_6 = arith.constant 0 : index
    %c0_7 = arith.constant 0 : index
    %8 = vector.load %arg8[%c0_6, %c0_7] : memref<16x32xf32, #tpu.memory_space<vmem>>, vector<16x32xf32>
    tpu.vector_store %arg8[%c0_6, %c0_7], %7 {strides = array<i32>} : memref<16x32xf32, #tpu.memory_space<vmem>>, vector<16x32xf32>,
    %c0_i32_8 = arith.constant 0 : i32
    %9 = arith.cmpi eq, %arg2, %c0_i32_8 : i32
    %10 = arith.extui %9 : i1 to i32
    %c0_i32_9 = arith.constant 0 : i32
    %11 = arith.cmpi ne, %10, %c0_i32_9 : i32
    scf.if %11 {
      %c0_10 = arith.constant 0 : index
      %c0_11 = arith.constant 0 : index
      %12 = vector.load %arg8[%c0_10, %c0_11] : memref<16x32xf32, #tpu.memory_space<vmem>>, vector<16x32xf32>
      %c0_12 = arith.constant 0 : index
      %c0_13 = arith.constant 0 : index
      %13 = vector.load %arg5[%c0_12, %c0_13] : memref<1x32xf32, #tpu.memory_space<vmem>>, vector<1x32xf32>
      %14 = vector.broadcast %13 : vector<1x32xf32> to vector<16x32xf32>
      %15 = arith.addf %12, %14 : vector<16x32xf32>
      %c0_14 = arith.constant 0 : index
      %c0_15 = arith.constant 0 : index
      %16 = vector.load %arg6[%c0_14, %c0_15] : memref<16x32xbf16, #tpu.memory_space<vmem>>, vector<16x32xbf16>
      %17 = arith.extf %16 : vector<16x32xbf16> to vector<16x32xf32>
      %18 = arith.addf %15, %17 : vector<16x32xf32>
      %19 = arith.truncf %18 : vector<16x32xf32> to vector<16x32xbf16>
      %c0_16 = arith.constant 0 : index
      %c0_17 = arith.constant 0 : index
      %20 = vector.load %arg7[%c0_16, %c0_17] : memref<16x32xbf16, #tpu.memory_space<vmem>>, vector<16x32xbf16>
      tpu.vector_store %arg7[%c0_16, %c0_17], %19 {strides = array<i32>} : memref<16x32xbf16, #tpu.memory_space<vmem>>, vector<16x32xbf16>,
    } else {
    }
    return
  }
  func.func @transform_0(%arg0: i32, %arg1: i32, %arg2: i32) -> (i32, i32) {
    %c0_i32 = arith.constant 0 : i32
    return %arg0, %arg2 : i32, i32
  }
  func.func @transform_1(%arg0: i32, %arg1: i32, %arg2: i32) -> (i32, i32) {
    %c0_i32 = arith.constant 0 : i32
    return %arg2, %arg1 : i32, i32
  }
  func.func @transform_2(%arg0: i32, %arg1: i32, %arg2: i32) -> (i32, i32) {
    %c0_i32 = arith.constant 0 : i32
    %c0_i32_0 = arith.constant 0 : i32
    return %c0_i32, %arg1 : i32, i32
  }
  func.func @transform_3(%arg0: i32, %arg1: i32, %arg2: i32) -> (i32, i32) {
    %c0_i32 = arith.constant 0 : i32
    return %arg0, %arg1 : i32, i32
  }
  func.func @transform_4(%arg0: i32, %arg1: i32, %arg2: i32) -> (i32, i32) {
    %c0_i32 = arith.constant 0 : i32
    return %arg0, %arg1 : i32, i32
  }
}

module attributes {stable_mosaic.version = 11 : i64} {
  func.func @_layernorm_kernel(%arg0: i32, %arg1: memref<16x32xbf16, #tpu.memory_space<vmem>>, %arg2: memref<1x32xf32, #tpu.memory_space<vmem>>, %arg3: memref<1x32xf32, #tpu.memory_space<vmem>>, %arg4: memref<16x32xf32, #tpu.memory_space<vmem>>) attributes {dimension_semantics = [#tpu.dimension_semantics<parallel>], iteration_bounds = array<i64: 1>, scalar_prefetch = 0 : i64, scratch_operands = 0 : i64, tpu.core_type = #tpu.core_type<tc>, window_params = [{transform_indices = @transform_0, window_bounds = array<i64: 16, 32>}, {pipeline_mode = #tpu.pipeline_mode<synchronous>, transform_indices = @transform_1, window_bounds = array<i64: 1, 32>}, {pipeline_mode = #tpu.pipeline_mode<synchronous>, transform_indices = @transform_2, window_bounds = array<i64: 1, 32>}, {transform_indices = @transform_3, window_bounds = array<i64: 16, 32>}]} {
    %c0 = arith.constant 0 : index
    %c0_0 = arith.constant 0 : index
    %0 = vector.load %arg1[%c0, %c0_0] : memref<16x32xbf16, #tpu.memory_space<vmem>>, vector<16x32xbf16>
    %1 = arith.extf %0 : vector<16x32xbf16> to vector<16x32xf32>
    %cst = arith.constant dense<0.000000e+00> : vector<16xf32>
    %2 = vector.multi_reduction <add>, %1, %cst [1] : vector<16x32xf32> to vector<16xf32>
    %3 = vector.shape_cast %2 : vector<16xf32> to vector<16x1xf32>
    %cst_1 = arith.constant 3.200000e+01 : f32
    %4 = vector.broadcast %cst_1 : f32 to vector<16x1xf32>
    %5 = arith.divf %3, %4 : vector<16x1xf32>
    %6 = vector.broadcast %5 : vector<16x1xf32> to vector<16x32xf32>
    %7 = arith.subf %1, %6 : vector<16x32xf32>
    %8 = arith.mulf %7, %7 : vector<16x32xf32>
    %cst_2 = arith.constant dense<0.000000e+00> : vector<16xf32>
    %9 = vector.multi_reduction <add>, %8, %cst_2 [1] : vector<16x32xf32> to vector<16xf32>
    %10 = vector.shape_cast %9 : vector<16xf32> to vector<16x1xf32>
    %cst_3 = arith.constant 3.200000e+01 : f32
    %11 = vector.broadcast %cst_3 : f32 to vector<16x1xf32>
    %12 = arith.divf %10, %11 : vector<16x1xf32>
    %cst_4 = arith.constant 9.99999974E-6 : f32
    %13 = vector.broadcast %cst_4 : f32 to vector<16x1xf32>
    %14 = arith.addf %12, %13 : vector<16x1xf32>
    %15 = math.rsqrt %14 : vector<16x1xf32>
    %16 = vector.broadcast %15 : vector<16x1xf32> to vector<16x32xf32>
    %17 = arith.mulf %7, %16 : vector<16x32xf32>
    %c0_5 = arith.constant 0 : index
    %c0_6 = arith.constant 0 : index
    %18 = vector.load %arg2[%c0_5, %c0_6] : memref<1x32xf32, #tpu.memory_space<vmem>>, vector<1x32xf32>
    %19 = vector.broadcast %18 : vector<1x32xf32> to vector<16x32xf32>
    %20 = arith.mulf %17, %19 : vector<16x32xf32>
    %c0_7 = arith.constant 0 : index
    %c0_8 = arith.constant 0 : index
    %21 = vector.load %arg3[%c0_7, %c0_8] : memref<1x32xf32, #tpu.memory_space<vmem>>, vector<1x32xf32>
    %22 = vector.broadcast %21 : vector<1x32xf32> to vector<16x32xf32>
    %23 = arith.addf %20, %22 : vector<16x32xf32>
    %c0_9 = arith.constant 0 : index
    %c0_10 = arith.constant 0 : index
    %24 = vector.load %arg4[%c0_9, %c0_10] : memref<16x32xf32, #tpu.memory_space<vmem>>, vector<16x32xf32>
    tpu.vector_store %arg4[%c0_9, %c0_10], %23 {strides = array<i32>} : memref<16x32xf32, #tpu.memory_space<vmem>>, vector<16x32xf32>,
    return
  }
  func.func @transform_0(%arg0: i32) -> (i32, i32) {
    %c0_i32 = arith.constant 0 : i32
    %c0_i32_0 = arith.constant 0 : i32
    return %arg0, %c0_i32 : i32, i32
  }
  func.func @transform_1(%arg0: i32) -> (i32, i32) {
    %c0_i32 = arith.constant 0 : i32
    %c0_i32_0 = arith.constant 0 : i32
    %c0_i32_1 = arith.constant 0 : i32
    return %c0_i32, %c0_i32_0 : i32, i32
  }
  func.func @transform_2(%arg0: i32) -> (i32, i32) {
    %c0_i32 = arith.constant 0 : i32
    %c0_i32_0 = arith.constant 0 : i32
    %c0_i32_1 = arith.constant 0 : i32
    return %c0_i32, %c0_i32_0 : i32, i32
  }
  func.func @transform_3(%arg0: i32) -> (i32, i32) {
    %c0_i32 = arith.constant 0 : i32
    %c0_i32_0 = arith.constant 0 : i32
    return %arg0, %c0_i32 : i32, i32
  }
}

</mosaic_0001>

<bundles_post_ra>
// kernel: whisper_full_feats_forward.20
= control target key start
LH: loop header
LB: loop body
LE: loop exit
PB: predicated region body
PF: predicated region fallthrough
CT: control target
= control target key end

     0   :  { %vm19_vm0 = vcmask 785408   ;;  %v151_v0 = vmov 0.0   ;;  %vm152_vm1 = vmmov 0   ;;  %vm47_vm2 = vcmask 261120   ;;  %s195_s1 = inlined_call_operand.vmem [shape: bf16[32,96], index: 1, kind: input, shape index: {}]   ;;  %s196_s0 = inlined_call_operand.vmem [shape: bf16[16,32], index: 0, kind: input, shape index: {}]   ;;  %s197_s2 = inlined_call_operand.vmem [shape: f32[1,96], index: 2, kind: input, shape index: {}]   ;;  %s198_s3 = inlined_call_operand.vmem [shape: bf16[16,96], index: 3, kind: output, shape index: {}]  }
   0x1   :  { %138 = vmatprep.subr.bf16.mxu0 %v151_v0  ;;  %v148_v1 = vld [vmem:[%s195_s1] sm:$0xff]   ;;  %142 = vmatprep.mubr.msk.bf16.mxu0 %vm152_vm1, %v151_v0  ;;  %20 = vst.msk [vmem:[#allocation2] sm:$0xff] %vm19_vm0, %v151_v0  ;;  %21 = vst.msk [vmem:[#allocation2 + $0x8] sm:$0xff] %vm19_vm0, %v151_v0  ;;  %v149_v2 = vld [vmem:[%s195_s1 + $0x8] sm:$0xff]   ;;  %vm119_vm3 = vcmask 781312  }
   0x2   :  { %139 = vmatpush3.bf16.msra.mxu0 %v148_v1  ;;  %v150_v3 = vld [vmem:[%s196_s0] sm:$0xff]  }
   0x3   :  { %140 = vmatprep.subr.bf16.mxu0 %v151_v0  ;;  %v130_v12 = vld [vmem:[%s197_s2] ss:$0 sm:$0xff] }
   0x6   :  { %141 = vmatpush3.bf16.msra.mxu0 %v149_v2 }
   0x8   :  { %v22_v4 = vld [vmem:[#allocation2] sm:$0xff]  ;;  %v23_v6 = vld [vmem:[#allocation2 + $0x8] sm:$0xff] }
   0x9   :  { %143 = vmatmul.mubr.msk.bf16.vlgmr.msra.gmra.mrb[0].mxu0 %vm47_vm2, %v150_v3 }
  0xdc   :  { %v85_v5 = vpop.f32.mrb[0].mxu0 }
  0xdd   :  { %v92_v7 = vadd.f32 %v85_v5, %v22_v4  ;;  %v144_v8 = vpop.f32.mrb[1].mxu0 }
  0xde   :  { %v88_v9 = vpop.f32.mrb[2].mxu0 }
  0xdf   :  { %95 = vst.msk [vmem:[#allocation2] sm:$0xff] %vm19_vm0, %v92_v7  ;;  %v93_v10 = vadd.f32 %v88_v9, %v23_v6  ;;  %v145_v11 = vpop.f32.mrb[3].mxu0 }
  0xe1   :  { %96 = vst.msk [vmem:[#allocation2 + $0x8] sm:$0xff] %vm19_vm0, %v93_v10 }
  0xe6   :  { %v100_v13 = vld [vmem:[#allocation2] sm:$0xff] }
  0xe7   :  { %v109_v14 = vadd.f32 %v130_v12, %v100_v13 }
  0xe8   :  { %v101_v15 = vld [vmem:[#allocation2 + $0x8] sm:$0xff] }
  0xe9   :  { %v133_v16 = vpack.c.bf16 %v109_v14, %v109_v14  ;;  %v110_v17 = vadd.f32 %v130_v12, %v101_v15 }
  0xeb   :  { %120 = vst.msk [vmem:[%s198_s3] sm:$0xf] %vm119_vm3, %v133_v16  ;;  %v134_v18 = vpack.c.bf16 %v110_v17, %v110_v17 }
  0xed   :  { %121 = vst.msk [vmem:[%s198_s3 + $0x4] sm:$0xf] %vm119_vm3, %v134_v18 }

// kernel: whisper_full_feats_forward.17
= control target key start
LH: loop header
LB: loop body
LE: loop exit
PB: predicated region body
PF: predicated region fallthrough
CT: control target
= control target key end

     0   :  { %s691_s12 = smov 0   ;;  %s693_s13 = smov 0   ;;  %s758_s0 = inlined_call_operand.vmem [shape: bf16[3,2,16,16], index: 0, kind: input, shape index: {}]   ;;  %s759_s1 = inlined_call_operand.vmem [shape: bf16[3,16,32], index: 1, kind: input, shape index: {}]   ;;  %s760_s2 = inlined_call_operand.vmem [shape: f32[1,32], index: 2, kind: input, shape index: {}]   ;;  %s761_s3 = inlined_call_operand.vmem [shape: bf16[2,16,32], index: 3, kind: output, shape index: {}]  }
   0x1   :  { %s695_s14 = smov 0   ;;  %s697_s15 = smov 0  }
   0x2   :  { %s699_s16 = smov 0  }
   0x3 LB: > { %s28_s17 = sadd.s32 1, %s658_s14  ;;  %s39_s18 = sadd.s32 1, %s662_s15  ;;  %s666_s16 = sphi %s699_s16, %s13_s16   ;;  %s662_s15 = sphi %s697_s15, %s765_s15   ;;  %s658_s14 = sphi %s695_s14, %s764_s14   ;;  %s654_s13 = sphi %s693_s13, %s763_s13   ;;  %s650_s12 = sphi %s691_s12, %s762_s12  }
   0x4   : > { %p29_p0 = scmp.ge.s32.totalorder %s28_s17, 3  ;;  %p549_p1 = scmp.ge.s32.totalorder %s666_s16, 1 }
   0x5   : > { %p203_p2 = scmp.lt.s32.totalorder %s666_s16, 7 }
   0x6   : > { %s767_s17 = smov (%p29_p0, %s28_s17), 0  ;;  %s769_s18 = smov (!%p29_p0, %s39_s18), %s662_s15 }
   0x7   : > { %p204_p3 = pnand %p549_p1, %p203_p2  ;;  %p41_p4 = scmp.ge.s32.totalorder %s769_s18, 2 }
   0x8   : > { %p254_p5 = scmp.lt.s32.totalorder (!%p204_p3), %s650_s12, 2  ;;  %p256_p6 = scmp.lt.s32.totalorder (!%p204_p3), %s654_s13, 1 }
   0x9   : > { %s771_s18 = smov (%p41_p4, %s769_s18), 0  ;;  %207 = sbr.rel (%p204_p3) target bundleno = 275 (0x113), region = 32 }
   0xa   : > { %p557_p7 = scmp.ne.s32.totalorder (!%p204_p3), %s650_s12, 0 }
  0x10   : > { %s255_s19 = scalar_select %p254_p5, %s650_s12, 2 }
  0x11   : > { %s773_s13 = smov (!%p256_p6, %s654_s13), 1  ;;  %295 = sbr.rel (%p557_p7) target bundleno = 24 (0x18), region = 36 }
  0x12   : > { %s551_s20 = sshll.u32 %s255_s19, 2  ;;  %s567_s21 = sshll.u32 %s255_s19, 3  ;;  %vm296_vm0 = vcmask (!%p557_p7), 261120   ;;  %v668_v0 = vmov (!%p557_p7), 0.0  }
  0x13   : > { %s550_s22 = sshll.u32 %s773_s13, 1  ;;  %s274_s25 = scalar_lea.vmem %s759_s1, %s567_s21  ;;  %297 = vst.msk [vmem:[#allocation2] sm:$0xff] (!%p557_p7), %vm296_vm0, %v668_v0  ;;  %298 = vst.msk [vmem:[#allocation2 + $0x8] sm:$0xff] (!%p557_p7), %vm296_vm0, %v668_v0 }
  0x14   : > { %s263_s26 = sadd.s32 %s551_s20, %s550_s22  ;;  %s568_s27 = sshll.u32 %s773_s13, 3 }
  0x15   : > { %s552_s28 = sshll.u32 %s263_s26, 2  ;;  %s731_s4 = scalar_lea.vmem %s761_s3, %s568_s27 }
  0x16   : > { %s265_s7 = scalar_lea.vmem %s758_s0, %s552_s28 }
  0x18 PF: > { %v622_v1 = vld [vmem:[%s274_s25] sm:$0xff]   ;;  %v669_v2 = vmov 0.0   ;;  %vm670_vm1 = vmmov 0   ;;  %vm316_vm2 = vcmask 130048   ;;  %vm363_vm3 = vcmask 261120   ;;  %p561_p8 = scmp.ne.s32.totalorder %s650_s12, 2 }
  0x19   : > { %573 = vmatprep.subr.bf16.mxu0 %v669_v2  ;;  %v623_v3 = vld [vmem:[%s265_s7] sm:$0xff]   ;;  %575 = vmatprep.mubr.msk.bf16.mxu0 %vm670_vm1, %v669_v2  ;;  %vm399_vm4 = vcmask (!%p561_p8), 257024  }
  0x1a   : > { %574 = vmatpush3.bf16.msra.mxu0 %v622_v1  ;;  %v299_v4 = vld [vmem:[#allocation2] sm:$0xff]  ;;  %v300_v6 = vld [vmem:[#allocation2 + $0x8] sm:$0xff] }
  0x1b   : > { %v562_v13 = vld [vmem:[%s760_s2] ss:$0 sm:$0xff] (!%p561_p8) }
  0x1d   : > { %576 = vmatmul.mubr.msk.bf16.vlgmr.msra.gmra.mrb[0].mxu0 %vm316_vm2, %v623_v3 }
  0xef   : > { %369 = sbr.rel (%p561_p8) target bundleno = 275 (0x113), region = 40 }
  0xf0   : > { %v354_v5 = vpop.f32.mrb[0].mxu0 }
  0xf1   : > { %v361_v7 = vadd.f32 %v354_v5, %v299_v4  ;;  %v577_v8 = vpop.f32.mrb[1].mxu0 }
  0xf2   : > { %v357_v9 = vpop.f32.mrb[2].mxu0 }
  0xf3   : > { %364 = vst.msk [vmem:[#allocation2] sm:$0xff] %vm363_vm3, %v361_v7  ;;  %v362_v10 = vadd.f32 %v357_v9, %v300_v6  ;;  %v578_v11 = vpop.f32.mrb[3].mxu0 }
  0xf5   : > { %365 = vst.msk [vmem:[#allocation2 + $0x8] sm:$0xff] %vm363_vm3, %v362_v10 }
  0xfa   : > { %v370_v12 = vld [vmem:[#allocation2] sm:$0xff] }
  0xfb   : > { %v379_v15 = vadd.f32 %v562_v13, %v370_v12 }
  0xfc   : > { %v371_v14 = vld [vmem:[#allocation2 + $0x8] sm:$0xff] }
  0xfd   : > { %v380_v16 = vadd.f32 %v562_v13, %v371_v14  ;;  %v383_v17 = vmul.f32 0.70710677, %v379_v15  ;;  %v381_v19 = vmul.f32 0.5, %v379_v15 }
  0xff   : > { %v384_v18 = vmul.f32 0.70710677, %v380_v16  ;;  %624 = verf.f32 %v383_v17  ;;  %v382_v21 = vmul.f32 0.5, %v380_v16 }
 0x101   : > { %626 = verf.f32 %v384_v18 }
 0x109   : > { %v625_v20 = vpop.eup %624 }
 0x10a   : > { %v387_v23 = vadd.f32 1.0, %v625_v20 }
 0x10b   : > { %v627_v22 = vpop.eup %626 }
 0x10c   : > { %v388_v24 = vadd.f32 1.0, %v627_v22  ;;  %v389_v25 = vmul.f32 %v387_v23, %v381_v19 }
 0x10e   : > { %v390_v26 = vmul.f32 %v388_v24, %v382_v21  ;;  %v569_v27 = vpack.c.bf16 %v389_v25, %v389_v25 }
 0x110   : > { %v570_v28 = vpack.c.bf16 %v390_v26, %v390_v26  ;;  %400 = vst.msk [vmem:[%s731_s4] sm:$0xf] %vm399_vm4, %v569_v27 }
 0x112   : > { %401 = vst.msk [vmem:[%s731_s4 + $0x4] sm:$0xf] %vm399_vm4, %v570_v28 }
 0x113 PF: > { %s13_s16 = sadd.s32 1, %s666_s16   ;;  %s762_s12 = smov %s658_s14 }
 0x114   : > { %p10_p9 = scmp.ge.s32.totalorder %s13_s16, 8   ;;  %s763_s13 = smov %s662_s15 }
 0x115   : > { %s764_s14 = smov %s767_s17  ;;  %s765_s15 = smov %s771_s18 }
 0x116   :  { %12 = sbr.rel (!%p10_p9) target bundleno = 3 (0x3), region = 76 }

// kernel: whisper_full_feats_forward.19
= control target key start
LH: loop header
LB: loop body
LE: loop exit
PB: predicated region body
PF: predicated region fallthrough
CT: control target
= control target key end

     0   :  { %vm18_vm0 = vcmask 261120   ;;  %vm72_vm1 = vcmask 257024   ;;  %s132_s0 = inlined_call_operand.vmem [shape: bf16[16,32], index: 0, kind: input, shape index: {}]   ;;  %s133_s1 = inlined_call_operand.vmem [shape: f32[1,32], index: 1, kind: input, shape index: {}]   ;;  %s134_s2 = inlined_call_operand.vmem [shape: f32[1,32], index: 2, kind: input, shape index: {}]   ;;  %s135_s3 = inlined_call_operand.vmem [shape: bf16[16,32], index: 3, kind: output, shape index: {}]  }
   0x1   :  { %v86_v0 = vld [vmem:[%s132_s0] sm:$0xff]  }
   0x2   :  { %v87_v1 = vunpack.c.l.bf16 %v86_v0  ;;  %v88_v2 = vunpack.c.h.bf16 %v86_v0  ;;  %v79_v22 = vld [vmem:[%s133_s1] ss:$0 sm:$0xff] }
   0x3   :  { %v80_v24 = vld [vmem:[%s134_s2] ss:$0 sm:$0xff] }
   0x4   :  { %v19_v3 = vsel %vm18_vm0, %v87_v1, 0.0  ;;  %v22_v4 = vsel %vm18_vm0, %v88_v2, 0.0 }
   0x5   :  { %20 = vadd.xlane.f32.xlu0 %v19_v3 }
   0x9   :  { %23 = vadd.xlane.f32.xlu0 %v22_v4 }
  0x92   :  { %v21_v5 = vpop.xlane.xlu0 %20 }
  0x93   :  { %v26_v6 = vmul.f32 0.03125, %v21_v5 }
  0x95   :  { %v28_v7 = vsub.f32 %v87_v1, %v26_v6 }
  0x96   :  { %v24_v8 = vpop.xlane.xlu0 %23 }
  0x97   :  { %v27_v9 = vmul.f32 0.03125, %v24_v8  ;;  %v30_v10 = vmul.f32 %v28_v7, %v28_v7 }
  0x99   :  { %v29_v11 = vsub.f32 %v88_v2, %v27_v9  ;;  %v32_v12 = vsel %vm18_vm0, %v30_v10, 0.0 }
  0x9a   :  { %33 = vadd.xlane.f32.xlu1 %v32_v12 }
  0x9b   :  { %v31_v13 = vmul.f32 %v29_v11, %v29_v11 }
  0x9d   :  { %v35_v14 = vsel %vm18_vm0, %v31_v13, 0.0 }
  0x9e   :  { %36 = vadd.xlane.f32.xlu1 %v35_v14 }
 0x127   :  { %v34_v15 = vpop.xlane.xlu1 %33 }
 0x128   :  { %v38_v16 = vmul.f32 0.03125, %v34_v15 }
 0x12a   :  { %v40_v17 = vadd.f32 1e-05, %v38_v16 }
 0x12b   :  { %v37_v18 = vpop.xlane.xlu1 %36 }
 0x12c   :  { %89 = vrsqrt.f32 %v40_v17  ;;  %v39_v19 = vmul.f32 0.03125, %v37_v18 }
 0x12e   :  { %v41_v20 = vadd.f32 1e-05, %v39_v19 }
 0x130   :  { %91 = vrsqrt.f32 %v41_v20 }
 0x136   :  { %v90_v21 = vpop.eup %89 }
 0x137   :  { %v44_v23 = vmul.f32 %v90_v21, %v28_v7 }
 0x139   :  { %v53_v25 = vmul.f32 %v79_v22, %v44_v23 }
 0x13a   :  { %v92_v26 = vpop.eup %91 }
 0x13b   :  { %v62_v27 = vadd.f32 %v80_v24, %v53_v25  ;;  %v45_v28 = vmul.f32 %v92_v26, %v29_v11 }
 0x13d   :  { %v83_v29 = vpack.c.bf16 %v62_v27, %v62_v27  ;;  %v54_v30 = vmul.f32 %v79_v22, %v45_v28 }
 0x13f   :  { %73 = vst.msk [vmem:[%s135_s3] sm:$0xf] %vm72_vm1, %v83_v29  ;;  %v63_v31 = vadd.f32 %v80_v24, %v54_v30 }
 0x141   :  { %v84_v32 = vpack.c.bf16 %v63_v31, %v63_v31 }
 0x143   :  { %74 = vst.msk [vmem:[%s135_s3 + $0x4] sm:$0xf] %vm72_vm1, %v84_v32 }

// kernel: whisper_full_feats_forward.18
= control target key start
LH: loop header
LB: loop body
LE: loop exit
PB: predicated region body
PF: predicated region fallthrough
CT: control target
= control target key end

     0   :  { %s722_s15 = smov 0   ;;  %s724_s16 = smov 0   ;;  %s791_s0 = inlined_call_operand.vmem [shape: bf16[3,2,8,32], index: 0, kind: input, shape index: {}]   ;;  %s792_s1 = inlined_call_operand.vmem [shape: bf16[3,32,32], index: 1, kind: input, shape index: {}]   ;;  %s793_s2 = inlined_call_operand.vmem [shape: f32[1,32], index: 2, kind: input, shape index: {}]   ;;  %s794_s3 = inlined_call_operand.vmem [shape: f32[8,32], index: 3, kind: input, shape index: {}]   ;;  %s795_s4 = inlined_call_operand.vmem [shape: bf16[2,8,32], index: 4, kind: output, shape index: {}]  }
   0x1   :  { %s726_s17 = smov 0   ;;  %s728_s18 = smov 0  }
   0x2   :  { %s730_s19 = smov 0  }
   0x3 LB: > { %s29_s20 = sadd.s32 1, %s684_s17  ;;  %s40_s21 = sadd.s32 1, %s688_s18  ;;  %s692_s19 = sphi %s730_s19, %s14_s19   ;;  %s688_s18 = sphi %s728_s18, %s799_s18   ;;  %s684_s17 = sphi %s726_s17, %s798_s17   ;;  %s680_s16 = sphi %s724_s16, %s797_s16   ;;  %s676_s15 = sphi %s722_s15, %s796_s15  }
   0x4   : > { %p30_p0 = scmp.ge.s32.totalorder %s29_s20, 3  ;;  %p581_p1 = scmp.ge.s32.totalorder %s692_s19, 1 }
   0x5   : > { %p239_p2 = scmp.lt.s32.totalorder %s692_s19, 7 }
   0x6   : > { %s801_s20 = smov (%p30_p0, %s29_s20), 0  ;;  %s803_s21 = smov (!%p30_p0, %s40_s21), %s688_s18 }
   0x7   : > { %p240_p3 = pnand %p581_p1, %p239_p2  ;;  %p42_p4 = scmp.ge.s32.totalorder %s803_s21, 2 }
   0x8   : > { %p294_p5 = scmp.lt.s32.totalorder (!%p240_p3), %s676_s15, 2  ;;  %p296_p6 = scmp.lt.s32.totalorder (!%p240_p3), %s680_s16, 1 }
   0x9   : > { %s805_s21 = smov (%p42_p4, %s803_s21), 0  ;;  %243 = sbr.rel (%p240_p3) target bundleno = 279 (0x117), region = 36 }
   0xa   : > { %p587_p7 = scmp.ne.s32.totalorder (!%p240_p3), %s676_s15, 0 }
  0x10   : > { %s295_s22 = scalar_select %p294_p5, %s676_s15, 2 }
  0x11   : > { %s807_s16 = smov (!%p296_p6, %s680_s16), 1  ;;  %337 = sbr.rel (%p587_p7) target bundleno = 24 (0x18), region = 40 }
  0x12   : > { %s582_s23 = sshll.u32 %s295_s22, 1  ;;  %s595_s24 = sshll.u32 %s295_s22, 4  ;;  %vm338_vm0 = vcmask (!%p587_p7), 261120   ;;  %v694_v0 = vmov (!%p587_p7), 0.0  }
  0x13   : > { %s302_s25 = sadd.s32 %s582_s23, %s807_s16  ;;  %s312_s28 = scalar_lea.vmem %s792_s1, %s595_s24  ;;  %339 = vst.msk [vmem:[#allocation2] sm:$0xff] (!%p587_p7), %vm338_vm0, %v694_v0 }
  0x14   : > { %s583_s29 = sshll.u32 %s302_s25, 2  ;;  %s586_s30 = sshll.u32 %s807_s16, 2 }
  0x15   : > { %s304_s7 = scalar_lea.vmem %s791_s0, %s583_s29  ;;  %s765_s10 = scalar_lea.vmem %s795_s4, %s586_s30 }
  0x18 PF: > { %v650_v1 = vld [vmem:[%s312_s28] sm:$0xff]   ;;  %v695_v2 = vmov 0.0   ;;  %v651_v3 = vld [vmem:[%s312_s28 + $0x8] sm:$0xff]   ;;  %vm696_vm1 = vmmov 0   ;;  %vm358_vm2 = vcmask 261120   ;;  %p591_p8 = scmp.ne.s32.totalorder %s676_s15, 2 }
  0x19   : > { %599 = vmatprep.subr.bf16.mxu0 %v695_v2  ;;  %603 = vmatprep.mubr.msk.bf16.mxu0 %vm696_vm1, %v695_v2  ;;  %v341_v4 = vld [vmem:[%s304_s7] sm:$0xf]  ;;  %vm425_vm3 = vcmask (!%p591_p8), 257024  }
  0x1a   : > { %600 = vmatpush3.bf16.msra.mxu0 %v650_v1  ;;  %v340_v5 = vld [vmem:[#allocation2] sm:$0xff] }
  0x1b   : > { %601 = vmatprep.subr.bf16.mxu0 %v695_v2  ;;  %v592_v12 = vld [vmem:[%s793_s2] ss:$0 sm:$0xff] (!%p591_p8) }
  0x1c   : > { %v422_v18 = vld [vmem:[%s794_s3] sm:$0xff] (!%p591_p8) }
  0x1e   : > { %602 = vmatpush3.bf16.msra.mxu0 %v651_v3 }
  0x21   : > { %604 = vmatmul.mubr.msk.bf16.vlgmr.msra.gmra.mrb[0].mxu0 %vm358_vm2, %v341_v4 }
  0xf1   : > { %407 = sbr.rel (%p591_p8) target bundleno = 279 (0x117), region = 44 }
  0xf4   : > { %v396_v6 = vpop.f32.mrb[0].mxu0 }
  0xf5   : > { %v402_v7 = vadd.f32 %v396_v6, %v340_v5  ;;  %v605_v8 = vpop.f32.mrb[1].mxu0 }
  0xf6   : > { %v399_v9 = vpop.f32.mrb[2].mxu0 }
  0xf7   : > { %403 = vst.msk [vmem:[#allocation2] sm:$0xff] %vm358_vm2, %v402_v7  ;;  %v606_v10 = vpop.f32.mrb[3].mxu0 }
  0xfe   : > { %v408_v11 = vld [vmem:[#allocation2] sm:$0xff] }
  0xff   : > { %v416_v13 = vadd.f32 %v592_v12, %v408_v11 }
 0x101   : > { %v418_v14 = vmul.f32 0.70710677, %v416_v13  ;;  %v417_v15 = vmul.f32 0.5, %v416_v13 }
 0x103   : > { %652 = verf.f32 %v418_v14 }
 0x10d   : > { %v653_v16 = vpop.eup %652 }
 0x10e   : > { %v420_v17 = vadd.f32 1.0, %v653_v16 }
 0x110   : > { %v421_v19 = vmul.f32 %v420_v17, %v417_v15 }
 0x112   : > { %v423_v20 = vadd.f32 %v422_v18, %v421_v19 }
 0x114   : > { %v424_v21 = vpack.c.bf16 %v423_v20, %v423_v20 }
 0x116   : > { %426 = vst.msk [vmem:[%s765_s10] sm:$0xf] %vm425_vm3, %v424_v21 }
 0x117 PF: > { %s14_s19 = sadd.s32 1, %s692_s19   ;;  %s796_s15 = smov %s684_s17 }
 0x118   : > { %p11_p9 = scmp.ge.s32.totalorder %s14_s19, 8   ;;  %s797_s16 = smov %s688_s18 }
 0x119   : > { %s798_s17 = smov %s801_s20  ;;  %s799_s18 = smov %s805_s21 }
 0x11a   :  { %13 = sbr.rel (!%p11_p9) target bundleno = 3 (0x3), region = 83 }

// kernel: whisper_full_feats_forward.22
= control target key start
LH: loop header
LB: loop body
LE: loop exit
PB: predicated region body
PF: predicated region fallthrough
CT: control target
= control target key end

     0   :  { %vm22_vm0 = vcmask 261120   ;;  %v163_v0 = vmov 0.0   ;;  %vm164_vm1 = vmmov 0   ;;  %vm127_vm2 = vcmask 257024   ;;  %s216_s1 = inlined_call_operand.vmem [shape: bf16[32,32], index: 1, kind: input, shape index: {}]   ;;  %s217_s0 = inlined_call_operand.vmem [shape: bf16[16,32], index: 0, kind: input, shape index: {}]   ;;  %s218_s3 = inlined_call_operand.vmem [shape: bf16[16,32], index: 3, kind: input, shape index: {}]   ;;  %s219_s2 = inlined_call_operand.vmem [shape: f32[1,32], index: 2, kind: input, shape index: {}]   ;;  %s220_s4 = inlined_call_operand.vmem [shape: bf16[16,32], index: 4, kind: output, shape index: {}]  }
   0x1   :  { %150 = vmatprep.subr.bf16.mxu0 %v163_v0  ;;  %v160_v1 = vld [vmem:[%s216_s1] sm:$0xff]   ;;  %154 = vmatprep.mubr.msk.bf16.mxu0 %vm164_vm1, %v163_v0  ;;  %23 = vst.msk [vmem:[#allocation2] sm:$0xff] %vm22_vm0, %v163_v0  ;;  %24 = vst.msk [vmem:[#allocation2 + $0x8] sm:$0xff] %vm22_vm0, %v163_v0  ;;  %v161_v2 = vld [vmem:[%s216_s1 + $0x8] sm:$0xff]  }
   0x2   :  { %151 = vmatpush3.bf16.msra.mxu0 %v160_v1  ;;  %v162_v3 = vld [vmem:[%s217_s0] sm:$0xff]  }
   0x3   :  { %152 = vmatprep.subr.bf16.mxu0 %v163_v0  ;;  %v144_v12 = vld [vmem:[%s218_s3] sm:$0xff]  }
   0x4   :  { %v138_v13 = vld [vmem:[%s219_s2] ss:$0 sm:$0xff]  ;;  %v145_v14 = vunpack.c.l.bf16 %v144_v12  ;;  %v146_v17 = vunpack.c.h.bf16 %v144_v12 }
   0x6   :  { %153 = vmatpush3.bf16.msra.mxu0 %v161_v2 }
   0x8   :  { %v25_v4 = vld [vmem:[#allocation2] sm:$0xff]  ;;  %v26_v6 = vld [vmem:[#allocation2 + $0x8] sm:$0xff] }
   0x9   :  { %155 = vmatmul.mubr.msk.bf16.vlgmr.msra.gmra.mrb[0].mxu0 %vm22_vm0, %v162_v3 }
  0xdc   :  { %v88_v5 = vpop.f32.mrb[0].mxu0 }
  0xdd   :  { %v95_v7 = vadd.f32 %v88_v5, %v25_v4  ;;  %v156_v8 = vpop.f32.mrb[1].mxu0 }
  0xde   :  { %v91_v9 = vpop.f32.mrb[2].mxu0 }
  0xdf   :  { %97 = vst.msk [vmem:[#allocation2] sm:$0xff] %vm22_vm0, %v95_v7  ;;  %v96_v10 = vadd.f32 %v91_v9, %v26_v6  ;;  %v157_v11 = vpop.f32.mrb[3].mxu0 }
  0xe1   :  { %98 = vst.msk [vmem:[#allocation2 + $0x8] sm:$0xff] %vm22_vm0, %v96_v10 }
  0xe6   :  { %v102_v15 = vld [vmem:[#allocation2] sm:$0xff] }
  0xe7   :  { %v111_v16 = vadd.f32 %v138_v13, %v102_v15 }
  0xe8   :  { %v103_v18 = vld [vmem:[#allocation2 + $0x8] sm:$0xff] }
  0xe9   :  { %v117_v19 = vadd.f32 %v145_v14, %v111_v16  ;;  %v112_v20 = vadd.f32 %v138_v13, %v103_v18 }
  0xeb   :  { %v141_v21 = vpack.c.bf16 %v117_v19, %v117_v19  ;;  %v118_v22 = vadd.f32 %v146_v17, %v112_v20 }
  0xed   :  { %128 = vst.msk [vmem:[%s220_s4] sm:$0xf] %vm127_vm2, %v141_v21  ;;  %v142_v23 = vpack.c.bf16 %v118_v22, %v118_v22 }
  0xef   :  { %129 = vst.msk [vmem:[%s220_s4 + $0x4] sm:$0xf] %vm127_vm2, %v142_v23 }

// kernel: whisper_full_feats_forward.24
= control target key start
LH: loop header
LB: loop body
LE: loop exit
PB: predicated region body
PF: predicated region fallthrough
CT: control target
= control target key end

     0   :  { %vm19_vm0 = vcmask 523264   ;;  %v165_v0 = vmov 0.0   ;;  %vm166_vm1 = vmmov 0   ;;  %vm47_vm2 = vcmask 261120   ;;  %s209_s1 = inlined_call_operand.vmem [shape: bf16[32,64], index: 1, kind: input, shape index: {}]   ;;  %s210_s0 = inlined_call_operand.vmem [shape: bf16[16,32], index: 0, kind: input, shape index: {}]   ;;  %s211_s2 = inlined_call_operand.vmem [shape: f32[1,64], index: 2, kind: input, shape index: {}]   ;;  %s212_s3 = inlined_call_operand.vmem [shape: bf16[16,64], index: 3, kind: output, shape index: {}]  }
   0x1   :  { %148 = vmatprep.subr.bf16.mxu0 %v165_v0  ;;  %v158_v1 = vld [vmem:[%s209_s1] sm:$0xff]   ;;  %152 = vmatprep.mubr.msk.bf16.mxu0 %vm166_vm1, %v165_v0  ;;  %20 = vst.msk [vmem:[#allocation2] sm:$0xff] %vm19_vm0, %v165_v0  ;;  %21 = vst.msk [vmem:[#allocation2 + $0x8] sm:$0xff] %vm19_vm0, %v165_v0  ;;  %v159_v2 = vld [vmem:[%s209_s1 + $0x8] sm:$0xff]   ;;  %vm129_vm3 = vcmask 519168  }
   0x2   :  { %149 = vmatpush3.bf16.msra.mxu0 %v158_v1  ;;  %v160_v3 = vld [vmem:[%s210_s0] sm:$0xff]  }
   0x3   :  { %150 = vmatprep.subr.bf16.mxu0 %v165_v0  ;;  %v140_v12 = vld [vmem:[%s211_s2] ss:$0 sm:$0xff] }
   0x6   :  { %151 = vmatpush3.bf16.msra.mxu0 %v159_v2 }
   0x8   :  { %v22_v4 = vld [vmem:[#allocation2] sm:$0xff]  ;;  %v23_v6 = vld [vmem:[#allocation2 + $0x8] sm:$0xff] }
   0x9   :  { %153 = vmatmul.mubr.msk.bf16.vlgmr.msra.gmra.mrb[0].mxu0 %vm47_vm2, %v160_v3 }
  0xdc   :  { %v85_v5 = vpop.f32.mrb[0].mxu0 }
  0xdd   :  { %v92_v7 = vadd.f32 %v85_v5, %v22_v4  ;;  %v154_v8 = vpop.f32.mrb[1].mxu0 }
  0xde   :  { %v88_v9 = vpop.f32.mrb[2].mxu0 }
  0xdf   :  { %95 = vst.msk [vmem:[#allocation2] sm:$0xff] %vm19_vm0, %v92_v7  ;;  %v93_v10 = vadd.f32 %v88_v9, %v23_v6  ;;  %v155_v11 = vpop.f32.mrb[3].mxu0 }
  0xe1   :  { %96 = vst.msk [vmem:[#allocation2 + $0x8] sm:$0xff] %vm19_vm0, %v93_v10 }
  0xe6   :  { %v100_v13 = vld [vmem:[#allocation2] sm:$0xff] }
  0xe7   :  { %v109_v14 = vadd.f32 %v140_v12, %v100_v13 }
  0xe8   :  { %v101_v15 = vld [vmem:[#allocation2 + $0x8] sm:$0xff] }
  0xe9   :  { %v113_v16 = vmul.f32 0.70710677, %v109_v14  ;;  %v110_v17 = vadd.f32 %v140_v12, %v101_v15  ;;  %v111_v20 = vmul.f32 0.5, %v109_v14 }
  0xeb   :  { %161 = verf.f32 %v113_v16  ;;  %v114_v18 = vmul.f32 0.70710677, %v110_v17  ;;  %v112_v24 = vmul.f32 0.5, %v110_v17 }
  0xed   :  { %163 = verf.f32 %v114_v18 }
  0xf5   :  { %v162_v19 = vpop.eup %161 }
  0xf6   :  { %v117_v21 = vadd.f32 1.0, %v162_v19 }
  0xf7   :  { %v164_v22 = vpop.eup %163 }
  0xf8   :  { %v119_v23 = vmul.f32 %v117_v21, %v111_v20  ;;  %v118_v25 = vadd.f32 1.0, %v164_v22 }
  0xfa   :  { %v143_v26 = vpack.c.bf16 %v119_v23, %v119_v23  ;;  %v120_v27 = vmul.f32 %v118_v25, %v112_v24 }
  0xfc   :  { %130 = vst.msk [vmem:[%s212_s3] sm:$0xf] %vm129_vm3, %v143_v26  ;;  %v144_v28 = vpack.c.bf16 %v120_v27, %v120_v27 }
  0xfe   :  { %131 = vst.msk [vmem:[%s212_s3 + $0x4] sm:$0xf] %vm129_vm3, %v144_v28 }

// kernel: whisper_full_feats_forward.21
= control target key start
LH: loop header
LB: loop body
LE: loop exit
PB: predicated region body
PF: predicated region fallthrough
CT: control target
= control target key end

     0   :  { %s638_s12 = smov 0   ;;  %s640_s13 = smov 0   ;;  %s694_s0 = inlined_call_operand.vmem [shape: bf16[8,8,8], index: 0, kind: input, shape index: {}]   ;;  %s695_s1 = inlined_call_operand.vmem [shape: bf16[8,8,8], index: 1, kind: input, shape index: {}]   ;;  %s696_s2 = inlined_call_operand.vmem [shape: bf16[8,8,8], index: 2, kind: input, shape index: {}]   ;;  %s697_s3 = inlined_call_operand.vmem [shape: bf16[8,8,8], index: 3, kind: output, shape index: {}]  }
   0x1   :  { %s642_s14 = smov 0  }
   0x2 LB: > { %s32_s15 = sadd.s32 1, %s608_s13  ;;  %p529_p0 = scmp.ge.s32.totalorder %s612_s14, 1  ;;  %s612_s14 = sphi %s642_s14, %s13_s14   ;;  %s608_s13 = sphi %s640_s13, %s699_s13   ;;  %s604_s12 = sphi %s638_s12, %s698_s12  }
   0x3   : > { %p34_p1 = scmp.ge.s32.totalorder %s32_s15, 8  ;;  %p190_p2 = scmp.lt.s32.totalorder %s612_s14, 9 }
   0x5   : > { %s701_s15 = smov (%p34_p1, %s32_s15), 0  ;;  %p191_p3 = pnand %p529_p0, %p190_p2 }
   0x6   : > { %p232_p4 = scmp.lt.s32.totalorder (!%p191_p3), %s604_s12, 7  ;;  %vm268_vm0 = vcmask (!%p191_p3), 64512   ;;  %v614_v0 = vmov (!%p191_p3), 0.0   ;;  %vm615_vm1 = vmmov (!%p191_p3), 0   ;;  %vm265_vm2 = vcmask (!%p191_p3), 7168  }
   0x7   : > { %194 = sbr.rel (%p191_p3) target bundleno = 825 (0x339), region = 32  ;;  %542 = vmatprep.subr.bf16.mxu0 (!%p191_p3), %v614_v0  ;;  %269 = vst.msk [vmem:[#allocation4] sm:$0xff] (!%p191_p3), %vm268_vm0, %v614_v0  ;;  %544 = vmatprep.mubr.msk.bf16.mxu0 (!%p191_p3), %vm615_vm1, %v614_v0  ;;  %v616_v4 = vmov (!%p191_p3), -inf   ;;  %v617_v11 = vmov (!%p191_p3), 0   ;;  %vm356_vm3 = vcmask (!%p191_p3), 1043456   ;;  %vm416_vm4 = vcmask (!%p191_p3), 60416  }
   0x8   : > { %548 = vmatprep.subr.bf16.mxu1 (!%p191_p3), %v614_v0  ;;  %550 = vmatprep.mubr.msk.bf16.mxu1 (!%p191_p3), %vm615_vm1, %v614_v0  ;;  %266 = vst.msk [vmem:[#allocation2] sm:$0xff] (!%p191_p3), %vm265_vm2, %v616_v4  ;;  %267 = vst.msk [vmem:[#allocation3] sm:$0xff] (!%p191_p3), %vm265_vm2, %v614_v0 }
   0x9   : > { %582 = vset.pattern.permute.xlu0 (!%p191_p3), %v617_v11  ;;  %583 = vset.pattern.permute.xlu1 (!%p191_p3), %v617_v11 }
   0xe   : > { %s703_s12 = smov (!%p232_p4, %s604_s12), 7  ;;  %v344_v32 = vld [vmem:[#allocation4] sm:$0xff] }
   0xf   : > { %s657_s16 = sshll.u32 %s703_s12, 2  ;;  %v320_v12 = vld [vmem:[#allocation2] sm:$0xff]  ;;  %v336_v26 = vld [vmem:[#allocation3] sm:$0xff] }
  0x10   : > { %s245_s19 = scalar_lea.vmem %s695_s1, %s657_s16  ;;  %s238_s22 = scalar_lea.vmem %s694_s0, %s657_s16 }
  0x11   : > { %v271_v1 = vld [vmem:[%s245_s19] sm:$0xf]  ;;  %s252_s25 = scalar_lea.vmem %s696_s2, %s657_s16  ;;  %s259_s28 = scalar_lea.vmem %s697_s3, %s657_s16 }
  0x12   : > { %v277_v2 = vsel %vm268_vm0, %v271_v1, 0  ;;  %v270_v3 = vld [vmem:[%s238_s22] sm:$0xf] }
  0x13   : > { %543 = vmatpush3.bf16.xpose.msra.mxu0 %v277_v2  ;;  %v352_v16 = vld [vmem:[%s252_s25] sm:$0xf] }
  0x14   : > { %v358_v17 = vsel %vm356_vm3, %v352_v16, 0 }
  0x15   : > { %549 = vmatpush3.bf16.msra.mxu1 %v358_v17 }
  0x1a   : > { %545 = vmatmul.mubr.msk.bf16.vlgmr.msra.gmra.mrb[0].mxu0 %vm268_vm0, %v270_v3 }
  0xed   : > { %v313_v5 = vpop.f32.mrb[0].mxu0 }
  0xee   : > { %v319_v6 = vmul.f32 0.35355338, %v313_v5  ;;  %v546_v7 = vpop.f32.mrb[1].mxu0 }
  0xef   : > { %v316_v8 = vpop.f32.mrb[2].mxu0 }
  0xf0   : > { %v547_v9 = vpop.f32.mrb[3].mxu0  ;;  %v321_v10 = vsel %vm268_vm0, %v319_v6, -inf }
  0xf1   : > { %322 = vmax.xlane.f32.xlu0 %v321_v10 }
 0x17e   : > { %v323_v13 = vpop.xlane.xlu0 %322 }
 0x17f   : > { %v324_v14 = vmax.f32 %v320_v12, %v323_v13 }
 0x181   : > { %v325_v15 = vsub.f32 %v320_v12, %v324_v14  ;;  %402 = vst.msk [vmem:[#allocation2] sm:$0xff] %vm265_vm2, %v324_v14  ;;  %330 = vperm.xlu0 %582, %v324_v14  }
 0x183   : > { %v326_v24 = vmul.f32 1.442695, %v325_v15 }
 0x200   : > { %v331_v18 = vpop.permute.xlu0 %330 }
 0x201   : > { %v333_v19 = vsub.f32 %v319_v6, %v331_v18 }
 0x203   : > { %v334_v20 = vmul.f32 1.442695, %v333_v19 }
 0x205   : > { %584 = vpow2.f32 %v334_v20 }
 0x206   : > { %586 = vpow2.f32 %v326_v24 }
 0x20f   : > { %v585_v21 = vpop.eup %584 }
 0x210   : > { %v338_v22 = vsel %vm268_vm0, %v585_v21, 0.0  ;;  %v351_v23 = vpack.c.bf16 %v585_v21, %v585_v21  ;;  %v587_v25 = vpop.eup %586 }
 0x211   : > { %339 = vadd.xlane.f32.xlu1 %v338_v22  ;;  %v337_v27 = vmul.f32 %v587_v25, %v336_v26 }
 0x212   : > { %551 = vmatmul.mubr.msk.bf16.vlgmr.msra.gmra.mrb[0].mxu1 %vm268_vm0, %v351_v23 }
 0x222   : > { %347 = vperm.xlu1 %583, %v587_v25  }
 0x29e   : > { %v340_v28 = vpop.xlane.xlu1 %339 }
 0x29f   : > { %v341_v29 = vadd.f32 %v340_v28, %v337_v27 }
 0x2a1   : > { %343 = vst.msk [vmem:[#allocation3] sm:$0xff] %vm265_vm2, %v341_v29 }
 0x2a2   : > { %v348_v33 = vpop.permute.xlu1 %347 }
 0x2a3   : > { %v350_v34 = vmul.f32 %v348_v33, %v344_v32 }
 0x2a8   : > { %v406_v30 = vld [vmem:[#allocation3] sm:$0xff] }
 0x2a9   : > { %588 = vrcp.f32 %v406_v30 }
 0x2b3   : > { %v589_v31 = vpop.eup %588 }
 0x2b4   : > { %411 = vperm.xlu1 %583, %v589_v31  }
 0x2e5   : > { %v394_v35 = vpop.f32.mrb[0].mxu1 }
 0x2e6   : > { %v400_v36 = vadd.f32 %v394_v35, %v350_v34  ;;  %v552_v37 = vpop.f32.mrb[1].mxu1 }
 0x2e7   : > { %v397_v38 = vpop.f32.mrb[2].mxu1 }
 0x2e8   : > { %401 = vst.msk [vmem:[#allocation4] sm:$0xff] %vm268_vm0, %v400_v36  ;;  %v553_v39 = vpop.f32.mrb[3].mxu1 }
 0x2ef   : > { %v408_v40 = vld [vmem:[#allocation4] sm:$0xff] }
 0x333   : > { %v412_v41 = vpop.permute.xlu1 %411 }
 0x334   : > { %v414_v42 = vmul.f32 %v412_v41, %v408_v40 }
 0x336   : > { %v415_v43 = vpack.c.bf16 %v414_v42, %v414_v42 }
 0x338   : > { %417 = vst.msk [vmem:[%s259_s28] sm:$0xf] %vm416_vm4, %v415_v43 }
 0x339 PF: > { %s13_s14 = sadd.s32 1, %s612_s14   ;;  %s698_s12 = smov %s608_s13 }
 0x33a   : > { %p10_p5 = scmp.ge.s32.totalorder %s13_s14, 10   ;;  %s699_s13 = smov %s701_s15 }
 0x33c   :  { %12 = sbr.rel (!%p10_p5) target bundleno = 2 (0x2), region = 76 }

// kernel: whisper_full_feats_forward.25
= control target key start
LH: loop header
LB: loop body
LE: loop exit
PB: predicated region body
PF: predicated region fallthrough
CT: control target
= control target key end

     0   :  { %vm22_vm0 = vcmask 261120   ;;  %v190_v0 = vmov 0.0   ;;  %vm191_vm1 = vmmov 0   ;;  %vm66_vm2 = vcmask 523264   ;;  %s248_s1 = inlined_call_operand.vmem [shape: bf16[64,32], index: 1, kind: input, shape index: {}]   ;;  %s249_s0 = inlined_call_operand.vmem [shape: bf16[16,64], index: 0, kind: input, shape index: {}]   ;;  %s250_s3 = inlined_call_operand.vmem [shape: bf16[16,32], index: 3, kind: input, shape index: {}]   ;;  %s251_s2 = inlined_call_operand.vmem [shape: f32[1,32], index: 2, kind: input, shape index: {}]   ;;  %s252_s4 = inlined_call_operand.vmem [shape: bf16[16,32], index: 4, kind: output, shape index: {}]  }
   0x1   :  { %171 = vmatprep.subr.bf16.mxu0 %v190_v0  ;;  %v185_v1 = vld [vmem:[%s248_s1] sm:$0xff]   ;;  %179 = vmatprep.mubr.msk.bf16.mxu0 %vm191_vm1, %v190_v0  ;;  %23 = vst.msk [vmem:[#allocation2] sm:$0xff] %vm22_vm0, %v190_v0  ;;  %24 = vst.msk [vmem:[#allocation2 + $0x8] sm:$0xff] %vm22_vm0, %v190_v0  ;;  %v186_v2 = vld [vmem:[%s248_s1 + $0x8] sm:$0xff]   ;;  %vm144_vm3 = vcmask 257024  }
   0x2   :  { %172 = vmatpush3.bf16.msra.mxu0 %v185_v1  ;;  %v187_v3 = vld [vmem:[%s248_s1 + $0x10] sm:$0xff]   ;;  %v188_v4 = vld [vmem:[%s248_s1 + $0x18] sm:$0xff]   ;;  %v189_v5 = vld [vmem:[%s249_s0] sm:$0xff]  }
   0x3   :  { %173 = vmatprep.subr.bf16.mxu0 %v190_v0  ;;  %v163_v14 = vld [vmem:[%s250_s3] sm:$0xff]  }
   0x4   :  { %v157_v15 = vld [vmem:[%s251_s2] ss:$0 sm:$0xff]  ;;  %v164_v16 = vunpack.c.l.bf16 %v163_v14  ;;  %v165_v19 = vunpack.c.h.bf16 %v163_v14 }
   0x6   :  { %174 = vmatpush3.bf16.msra.mxu0 %v186_v2 }
   0x7   :  { %175 = vmatprep.subr.bf16.mxu0 %v190_v0 }
   0x8   :  { %v25_v6 = vld [vmem:[#allocation2] sm:$0xff]  ;;  %v26_v8 = vld [vmem:[#allocation2 + $0x8] sm:$0xff] }
   0xa   :  { %176 = vmatpush3.bf16.msra.mxu0 %v187_v3 }
   0xb   :  { %177 = vmatprep.subr.bf16.mxu0 %v190_v0 }
   0xe   :  { %178 = vmatpush3.bf16.msra.mxu0 %v188_v4 }
  0x11   :  { %180 = vmatmul.mubr.msk.bf16.vlgmr.msra.gmra.mrb[0].mxu0 %vm66_vm2, %v189_v5 }
  0xe4   :  { %v104_v7 = vpop.f32.mrb[0].mxu0 }
  0xe5   :  { %v111_v9 = vadd.f32 %v104_v7, %v25_v6  ;;  %v181_v10 = vpop.f32.mrb[1].mxu0 }
  0xe6   :  { %v107_v11 = vpop.f32.mrb[2].mxu0 }
  0xe7   :  { %114 = vst.msk [vmem:[#allocation2] sm:$0xff] %vm22_vm0, %v111_v9  ;;  %v112_v12 = vadd.f32 %v107_v11, %v26_v8  ;;  %v182_v13 = vpop.f32.mrb[3].mxu0 }
  0xe9   :  { %115 = vst.msk [vmem:[#allocation2 + $0x8] sm:$0xff] %vm22_vm0, %v112_v12 }
  0xee   :  { %v119_v17 = vld [vmem:[#allocation2] sm:$0xff] }
  0xef   :  { %v128_v18 = vadd.f32 %v157_v15, %v119_v17 }
  0xf0   :  { %v120_v20 = vld [vmem:[#allocation2 + $0x8] sm:$0xff] }
  0xf1   :  { %v134_v21 = vadd.f32 %v164_v16, %v128_v18  ;;  %v129_v22 = vadd.f32 %v157_v15, %v120_v20 }
  0xf3   :  { %v160_v23 = vpack.c.bf16 %v134_v21, %v134_v21  ;;  %v135_v24 = vadd.f32 %v165_v19, %v129_v22 }
  0xf5   :  { %145 = vst.msk [vmem:[%s252_s4] sm:$0xf] %vm144_vm3, %v160_v23  ;;  %v161_v25 = vpack.c.bf16 %v135_v24, %v135_v24 }
  0xf7   :  { %146 = vst.msk [vmem:[%s252_s4 + $0x4] sm:$0xf] %vm144_vm3, %v161_v25 }

// kernel: whisper_full_feats_forward.33
= control target key start
LH: loop header
LB: loop body
LE: loop exit
PB: predicated region body
PF: predicated region fallthrough
CT: control target
= control target key end

     0   :  { %vm19_vm0 = vcmask 261120   ;;  %s170_s0 = inlined_call_operand.vmem [shape: bf16[16,32], index: 0, kind: input, shape index: {}]   ;;  %s171_s1 = inlined_call_operand.vmem [shape: f32[1,32], index: 1, kind: input, shape index: {}]   ;;  %s172_s2 = inlined_call_operand.vmem [shape: f32[1,32], index: 2, kind: input, shape index: {}]   ;;  %s173_s3 = inlined_call_operand.hbm [shape: f32[16,32], index: 3, kind: output, shape index: {}]  }
   0x1   :  { %v86_v0 = vld [vmem:[%s170_s0] sm:$0xff]  }
   0x2   :  { %8 = vsyncpa [#allocation3], 0  ;;  %v87_v1 = vunpack.c.l.bf16 %v86_v0  ;;  %v88_v2 = vunpack.c.h.bf16 %v86_v0  ;;  %v83_v22 = vld [vmem:[%s171_s1] ss:$0 sm:$0xff]  ;;  %s120_s17 = smov [#allocation2]  }
   0x3   :  { %v84_v24 = vld [vmem:[%s172_s2] ss:$0 sm:$0xff]  ;;  %s72_s18 = sshll.u32 %s120_s17, 4  ;;  %s73_s18 = int_to_ptr.vmem [resolvable:$true] %s72_s18 }
   0x4   :  { %v20_v3 = vsel %vm19_vm0, %v87_v1, 0.0  ;;  %v23_v4 = vsel %vm19_vm0, %v88_v2, 0.0  ;;  %s96_s19 = scalar_lea.vmem %s73_s18, 256  ;;  %p101_p1 = scmp.lt.s32.totalorder %s73_s18, %s73_s18 }
   0x5   :  { %21 = vadd.xlane.f32.xlu0 %v20_v3  ;;  %p97_p0 = scmp.ne.s32.totalorder %s73_s18, %s96_s19  ;;  %p102_p2 = scmp.lt.s32.totalorder %s96_s19, %s96_s19 }
   0x7   :  { %p103_p3 = por %p102_p2, %p101_p1 }
   0x9   :  { %24 = vadd.xlane.f32.xlu0 %v23_v4  ;;  %p104_p4 = pnand %p103_p3, %p97_p0 }
  0x92   :  { %v22_v5 = vpop.xlane.xlu0 %21 }
  0x93   :  { %v27_v6 = vmul.f32 0.03125, %v22_v5 }
  0x95   :  { %v29_v7 = vsub.f32 %v87_v1, %v27_v6 }
  0x96   :  { %v25_v8 = vpop.xlane.xlu0 %24 }
  0x97   :  { %v28_v9 = vmul.f32 0.03125, %v25_v8  ;;  %v31_v10 = vmul.f32 %v29_v7, %v29_v7 }
  0x99   :  { %v30_v11 = vsub.f32 %v88_v2, %v28_v9  ;;  %v33_v12 = vsel %vm19_vm0, %v31_v10, 0.0 }
  0x9a   :  { %34 = vadd.xlane.f32.xlu1 %v33_v12 }
  0x9b   :  { %v32_v13 = vmul.f32 %v30_v11, %v30_v11 }
  0x9d   :  { %v36_v14 = vsel %vm19_vm0, %v32_v13, 0.0 }
  0x9e   :  { %37 = vadd.xlane.f32.xlu1 %v36_v14 }
 0x127   :  { %v35_v15 = vpop.xlane.xlu1 %34 }
 0x128   :  { %v39_v16 = vmul.f32 0.03125, %v35_v15 }
 0x12a   :  { %v41_v17 = vadd.f32 1e-05, %v39_v16 }
 0x12b   :  { %v38_v18 = vpop.xlane.xlu1 %37 }
 0x12c   :  { %92 = vrsqrt.f32 %v41_v17  ;;  %v40_v19 = vmul.f32 0.03125, %v38_v18 }
 0x12e   :  { %v42_v20 = vadd.f32 1e-05, %v40_v19 }
 0x130   :  { %94 = vrsqrt.f32 %v42_v20 }
 0x136   :  { %v93_v21 = vpop.eup %92 }
 0x137   :  { %v45_v23 = vmul.f32 %v93_v21, %v29_v7 }
 0x139   :  { %v54_v25 = vmul.f32 %v83_v22, %v45_v23 }
 0x13a   :  { %v95_v26 = vpop.eup %94 }
 0x13b   :  { %v46_v27 = vmul.f32 %v95_v26, %v30_v11  ;;  %v63_v28 = vadd.f32 %v84_v24, %v54_v25 }
 0x13d   :  { %v55_v29 = vmul.f32 %v83_v22, %v46_v27  ;;  %65 = vst.msk [vmem:[#allocation2] sm:$0xff] %vm19_vm0, %v63_v28 }
 0x13f   :  { %v64_v30 = vadd.f32 %v84_v24, %v55_v29 }
 0x141   :  { %66 = vst.msk [vmem:[#allocation2 + $0x8] sm:$0xff] %vm19_vm0, %v64_v30 }
 0x142   :  { %107 = shalt.err (!%p104_p4)
}
 0x143   :  { %s108_s20 = scalar_lea.hbm %s173_s3, 256 }
 0x144   :  { %p109_p5 = scmp.ne.s32.totalorder %s173_s3, %s108_s20  ;;  %p112_p6 = scmp.lt.u32.totalorder %s108_s20, %s173_s3 }
 0x146   :  { %p114_p7 = pnand %p112_p6, %p109_p5 }
 0x148   :  { %117 = shalt.err (!%p114_p7)
}
 0x149   :  { %s121_s25 = smov 128   ;;  %s122_s26 = smov 8  }
 0x14a   :  { %78 = dma.vmem_to_hbm [thread:$0]  %s73_s18, 256, %s173_s3, [#allocation3], %s121_s25, %s121_s25, %s122_s26  }
 0x14b   :  { %118 = dma.done.wait [#allocation3], 256  }
 0x14c   :  { %119 = vsyncadd [#allocation3], 4294967040 }
 0x14d   :  { %82 = vsyncpa [#allocation3], 1 }

</bundles_post_ra>
